<compile_context>
chip_gen: v5e
topology: v5e:2x2
jax: 0.10.0
libtpu: 0.0.40
codegen_flags: <defaults>
</compile_context>

<pallas_src>
import functools

import jax
import jax.numpy as jnp
from jax.experimental import pallas as pl
from jax.experimental.pallas import tpu as pltpu


LANE = 128

CFG = dict(
    vocab_size=100,
    hidden=32,
    num_heads=4,
    num_layers=2,
    intermediate=128,     # 4 * hidden, as in RoBERTa
    max_pos=16,
    num_labels=2,
    pad_token_id=1,
    layer_norm_eps=1e-5,
)


# ----------------------------- fused Pallas kernel -------------------------- #

def _roberta_fwd_kernel(
    emb_ref,     # (B*S, H)     f32   word+pos+type embeddings (batch folded on sublanes)
    bias_ref,    # (B*S, B*S)   f32   block-diagonal additive attention mask
    wqkv_ref,    # (nl, H, 128) bf16  [Wq*scale | Wk | Wv | 0-pad]
    wo_ref,      # (nl, H, H)   bf16  attention output projection
    wi_ref,      # (nl, H, I)   bf16  FFN in
    wo2_ref,     # (nl, I, H)   bf16  FFN out
    lvec_ref,    # (nl, 8, 128) f32   per-layer vectors (biases / LN params)
    gvec_ref,    # (8, 128)     f32   global vectors (emb LN, head biases)
    cls_w_ref,   # (H, H)       bf16  classifier dense
    out_w_ref,   # (H, 128)     bf16  classifier out-proj (lane padded)
    o_ref,       # (B, 128)     f32   logits (lane padded)
    *, num_heads, eps):
    f32 = jnp.float32
    bf16 = jnp.bfloat16

    BS, H = emb_ref.shape
    B = o_ref.shape[0]
    S = BS // B
    nl = wqkv_ref.shape[0]
    I = wi_ref.shape[2]
    nH = num_heads
    dH = H // nH

    def ln(x, g, b):  # LayerNorm statistics in f32
        mu = jnp.mean(x, axis=-1, keepdims=True)
        xc = x - mu
        var = jnp.mean(xc * xc, axis=-1, keepdims=True)
        return xc * jax.lax.rsqrt(var + eps) * g + b

    def gelu(y):
        # TODO(synk): HF RoBERTa 'gelu' is exact erf-GELU; tanh approximation
        # (max abs deviation ~1e-3) used since erf lowering in Mosaic isn't guaranteed.
        return 0.5 * y * (1.0 + jnp.tanh(0.7978845608028654 * (y + 0.044715 * y * y * y)))

    gv = gvec_ref[...]                     # (8, 128) f32
    bias = bias_ref[...]                   # (BS, BS) f32

    # Embedding LayerNorm.
    x = ln(emb_ref[...], gv[0:1, :H], gv[1:2, :H])          # (BS, H) f32, VMEM/vreg resident

    for l in range(nl):
        lv = lvec_ref[l]                                    # (8, 128) f32
        xb = x.astype(bf16)

        # ---- fused QKV projection: one lane-dense matmul, scale folded into Q ----
        qkv = jnp.dot(xb, wqkv_ref[l], preferred_element_type=f32) + lv[0:1, :]   # (BS,128)
        qkvb = qkv.astype(bf16)

        # heads on the leading axis: (nH, BS, dH)
        q3 = jnp.stack([qkvb[:, h * dH:(h + 1) * dH] for h in range(nH)], axis=0)
        k3 = jnp.stack([qkvb[:, H + h * dH:H + (h + 1) * dH] for h in range(nH)], axis=0)
        v3 = jnp.stack([qkvb[:, 2 * H + h * dH:2 * H + (h + 1) * dH] for h in range(nH)], axis=0)

        # ---- head-batched attention: one score einsum, one softmax, one PV einsum ----
        s = jnp.einsum('hqd,hkd->hqk', q3, k3, preferred_element_type=f32) + bias  # (nH,BS,BS)
        m = jnp.max(s, axis=-1, keepdims=True)
        p = jnp.exp(s - m)
        p = p * pl.reciprocal(jnp.sum(p, axis=-1, keepdims=True), approx=True)
        ctx3 = jnp.einsum('hqk,hkd->hqd', p.astype(bf16), v3,
                          preferred_element_type=f32)                              # (nH,BS,dH)

        # head concat on lanes + single output projection matmul
        ctx = jnp.concatenate([ctx3[h] for h in range(nH)], axis=-1)                # (BS, H)
        attn = jnp.dot(ctx.astype(bf16), wo_ref[l], preferred_element_type=f32) + lv[1:2, :H]
        x = ln(attn + x, lv[2:3, :H], lv[3:4, :H])

        # ---- feed-forward ----
        ff = jnp.dot(x.astype(bf16), wi_ref[l], preferred_element_type=f32) + lv[4:5, :I]
        ff = gelu(ff)
        y = jnp.dot(ff.astype(bf16), wo2_ref[l], preferred_element_type=f32) + lv[5:6, :H]
        x = ln(y + x, lv[6:7, :H], lv[7:8, :H])

    # ---- classification head on the <s> token of each sequence (rows 0, S, ...) ----
    xs = jnp.concatenate([x[b * S:b * S + 1, :] for b in range(B)], axis=0)        # (B, H)
    cls = jnp.tanh(jnp.dot(xs.astype(bf16), cls_w_ref[...],
                           preferred_element_type=f32) + gv[2:3, :H])
    logits = jnp.dot(cls.astype(bf16), out_w_ref[...],
                     preferred_element_type=f32) + gv[3:4, :]                      # (B, 128)
    o_ref[...] = logits.astype(o_ref.dtype)


# ----------------------------- parameters ----------------------------------- #

def init_params(key, cfg):
    std = 0.02
    keys = iter(jax.random.split(key, 64))
    H, I, V, P, L = (cfg["hidden"], cfg["intermediate"], cfg["vocab_size"],
                     cfg["max_pos"], cfg["num_labels"])

    def nrm(shape):
        return (std * jax.random.normal(next(keys), shape)).astype(jnp.float32)

    params = {
        "word_emb": nrm((V, H)),
        "pos_emb": nrm((P, H)),
        "type_emb": nrm((1, H)),
        "emb_ln_g": jnp.ones((H,), jnp.float32),
        "emb_ln_b": jnp.zeros((H,), jnp.float32),
        "layers": [],
        "cls_dense_w": nrm((H, H)),
        "cls_dense_b": jnp.zeros((H,), jnp.float32),
        "cls_out_w": nrm((H, L)),
        "cls_out_b": jnp.zeros((L,), jnp.float32),
    }
    for _ in range(cfg["num_layers"]):
        params["layers"].append({
            "wq": nrm((H, H)), "bq": jnp.zeros((H,), jnp.float32),
            "wk": nrm((H, H)), "bk": jnp.zeros((H,), jnp.float32),
            "wv": nrm((H, H)), "bv": jnp.zeros((H,), jnp.float32),
            "wo": nrm((H, H)), "bo": jnp.zeros((H,), jnp.float32),
            "ln1_g": jnp.ones((H,), jnp.float32), "ln1_b": jnp.zeros((H,), jnp.float32),
            "wi": nrm((H, I)), "bi": jnp.zeros((I,), jnp.float32),
            "wo2": nrm((I, H)), "bo2": jnp.zeros((H,), jnp.float32),
            "ln2_g": jnp.ones((H,), jnp.float32), "ln2_b": jnp.zeros((H,), jnp.float32),
        })
    return params


def pack_params(params, cfg):
    """Repack weights for the fused kernel: fused lane-dense QKV (scale folded into Q),
    bf16 matmul weights, and all small vectors consolidated into two f32 slabs."""
    H = cfg["hidden"]; nH = cfg["num_heads"]; dH = H // nH
    I = cfg["intermediate"]; L = cfg["num_labels"]; nl = cfg["num_layers"]
    assert 3 * H <= LANE and I <= LANE and L <= LANE, "toy-config packing assumes <=128 lanes"
    scale = 1.0 / (dH ** 0.5)
    bf16, f32 = jnp.bfloat16, jnp.float32

    def stack(name):
        return jnp.stack([lp[name] for lp in params["layers"]])

    def row(v):   # (nl, k) -> (nl, 1, LANE) zero-padded
        return jnp.pad(v, ((0, 0), (0, LANE - v.shape[-1])))[:, None, :]

    def grow(v):  # (k,) -> (1, LANE) zero-padded
        return jnp.pad(v, (0, LANE - v.shape[0]))[None, :]

    # Fused QKV weight, zero-padded to 128 lanes, 1/sqrt(dH) folded into Q columns.
    wqkv = jnp.concatenate([stack("wq") * scale, stack("wk"), stack("wv")], axis=-1)  # (nl,H,3H)
    wqkv = jnp.pad(wqkv, ((0, 0), (0, 0), (0, LANE - 3 * H)))

    bqkv = jnp.concatenate([stack("bq") * scale, stack("bk"), stack("bv")], axis=-1)  # (nl,3H)

    # Per-layer vector slab: rows = [bqkv, bo, ln1_g, ln1_b, bi, bo2, ln2_g, ln2_b].
    lvec = jnp.concatenate([
        row(bqkv), row(stack("bo")), row(stack("ln1_g")), row(stack("ln1_b")),
        row(stack("bi")), row(stack("bo2")), row(stack("ln2_g")), row(stack("ln2_b")),
    ], axis=1).astype(f32)                                                          # (nl,8,128)

    # Global vector slab: rows = [emb_ln_g, emb_ln_b, cls_b, out_b, 0, 0, 0, 0].
    gvec = jnp.concatenate([
        grow(params["emb_ln_g"]), grow(params["emb_ln_b"]),
        grow(params["cls_dense_b"]), grow(params["cls_out_b"]),
        jnp.zeros((4, LANE), f32),
    ], axis=0).astype(f32)                                                          # (8,128)

    out_w = jnp.pad(params["cls_out_w"], ((0, 0), (0, LANE - L)))                   # (H,128)

    return {
        "word_emb": params["word_emb"],
        "pos_emb": params["pos_emb"],
        "type_emb": params["type_emb"],
        "wqkv": wqkv.astype(bf16),          # (nl, H, 128)
        "wo": stack("wo").astype(bf16),     # (nl, H, H)
        "wi": stack("wi").astype(bf16),     # (nl, H, I)
        "wo2": stack("wo2").astype(bf16),   # (nl, I, H)
        "lvec": lvec,                       # (nl, 8, 128)
        "gvec": gvec,                       # (8, 128)
        "cls_w": params["cls_dense_w"].astype(bf16),   # (H, H)
        "out_w": out_w.astype(bf16),        # (H, 128)
    }


_WEIGHT_KEYS = ("wqkv", "wo", "wi", "wo2", "lvec", "gvec", "cls_w", "out_w")


# ----------------------------- forward wrapper ------------------------------ #

def text_classifier_forward(packed, input_ids, attention_mask, cfg=CFG):
    """Equivalent of TextClassifier.forward(x, x_att) -> logits (eval mode, no dropout)."""
    B, S = input_ids.shape
    BS = B * S
    H = cfg["hidden"]; nH = cfg["num_heads"]; I = cfg["intermediate"]
    nl = cfg["num_layers"]; eps = cfg["layer_norm_eps"]; pad_id = cfg["pad_token_id"]
    num_labels = cfg["num_labels"]

    # RoBERTa embeddings (gathers stay in plain JAX); batch folded onto sublanes.
    not_pad = (input_ids != pad_id).astype(jnp.int32)
    position_ids = jnp.cumsum(not_pad, axis=1) * not_pad + pad_id
    emb = (jnp.take(packed["word_emb"], input_ids, axis=0)
           + jnp.take(packed["pos_emb"], position_ids, axis=0)
           + packed["type_emb"][0][None, None, :]).astype(jnp.float32)              # (B,S,H)
    emb = emb.reshape(BS, H)

    # Block-diagonal additive attention bias: -1e9 across sequences or on padded keys.
    seq_id = jnp.arange(BS) // S
    same_seq = seq_id[:, None] == seq_id[None, :]
    key_ok = (attention_mask.reshape(BS) > 0)[None, :]
    bias = jnp.where(same_seq & key_ok, 0.0, -1e9).astype(jnp.float32)               # (BS,BS)

    weights = [packed[k] for k in _WEIGHT_KEYS]
    vmem = pl.BlockSpec(memory_space=pltpu.MemorySpace.VMEM)

    # Advisory cost estimate for the XLA scheduler.
    flops = (nl * (2 * BS * H * LANE            # fused QKV
                   + 4 * nH * BS * BS * (H // nH)  # scores + PV
                   + 2 * BS * H * H             # output projection
                   + 4 * BS * H * I)            # FFN
             + 2 * B * H * H + 2 * B * H * LANE)
    transc = nl * (nH * BS * BS + BS * I) + B * H
    nbytes = (emb.size * 4 + bias.size * 4 + B * LANE * 4
              + sum(int(w.size) * w.dtype.itemsize for w in weights))

    kernel = functools.partial(_roberta_fwd_kernel, num_heads=nH, eps=eps)
    out = pl.pallas_call(
        kernel,
        out_shape=jax.ShapeDtypeStruct((B, LANE), jnp.float32),
        in_specs=[vmem] * (2 + len(weights)),
        out_specs=vmem,
        cost_estimate=pl.CostEstimate(flops=int(flops), transcendentals=int(transc),
                                      bytes_accessed=int(nbytes)),
    )(emb, bias, *weights)

    # Drop lane padding; rows are already the <s> token of each sequence.
    return out[:, :num_labels]


# ----------------------------- pure-JAX reference --------------------------- #

def reference_forward(params, input_ids, attention_mask, cfg=CFG):
    B, S = input_ids.shape
    H = cfg["hidden"]; nH = cfg["num_heads"]; dH = H // nH
    eps = cfg["layer_norm_eps"]; pad_id = cfg["pad_token_id"]

    def ln(x, g, b):
        mu = jnp.mean(x, -1, keepdims=True)
        var = jnp.mean((x - mu) ** 2, -1, keepdims=True)
        return (x - mu) * jax.lax.rsqrt(var + eps) * g + b

    not_pad = (input_ids != pad_id).astype(jnp.int32)
    pos_ids = jnp.cumsum(not_pad, axis=1) * not_pad + pad_id
    x = (jnp.take(params["word_emb"], input_ids, axis=0)
         + jnp.take(params["pos_emb"], pos_ids, axis=0)
         + params["type_emb"][0][None, None, :])
    x = ln(x, params["emb_ln_g"], params["emb_ln_b"])
    bias = ((1.0 - attention_mask.astype(jnp.float32)) * -1e9)[:, None, None, :]
    scale = 1.0 / (dH ** 0.5)
    for lp in params["layers"]:
        q = (x @ lp["wq"] + lp["bq"]).reshape(B, S, nH, dH).transpose(0, 2, 1, 3)
        k = (x @ lp["wk"] + lp["bk"]).reshape(B, S, nH, dH).transpose(0, 2, 1, 3)
        v = (x @ lp["wv"] + lp["bv"]).reshape(B, S, nH, dH).transpose(0, 2, 1, 3)
        s = jnp.einsum("bhqd,bhkd->bhqk", q, k) * scale + bias
        p = jax.nn.softmax(s, axis=-1)
        ctx = jnp.einsum("bhqk,bhkd->bhqd", p, v).transpose(0, 2, 1, 3).reshape(B, S, H)
        x = ln(ctx @ lp["wo"] + lp["bo"] + x, lp["ln1_g"], lp["ln1_b"])
        ff = x @ lp["wi"] + lp["bi"]
        ff = 0.5 * ff * (1.0 + jnp.tanh(0.7978845608028654 * (ff + 0.044715 * ff ** 3)))
        x = ln(ff @ lp["wo2"] + lp["bo2"] + x, lp["ln2_g"], lp["ln2_b"])
    cls = jnp.tanh(x[:, 0, :] @ params["cls_dense_w"] + params["cls_dense_b"])
    return cls @ params["cls_out_w"] + params["cls_out_b"]


# ---------------------------------- main ------------------------------------ #

if __name__ == "__main__":
    key = jax.random.PRNGKey(0)
    pkey, ikey = jax.random.split(key)

    params = init_params(pkey, CFG)
    packed = pack_params(params, CFG)

    B, S = 2, 8
    input_ids = jax.random.randint(ikey, (B, S), 2, CFG["vocab_size"], dtype=jnp.int32)
    # pad the tail of the second sequence to exercise the attention mask
    input_ids = input_ids.at[1, -2:].set(CFG["pad_token_id"])
    attention_mask = (input_ids != CFG["pad_token_id"]).astype(jnp.int32)

    fwd = jax.jit(lambda ids, att: text_classifier_forward(packed, ids, att))
    logits = fwd(input_ids, attention_mask)
    jax.block_until_ready(logits)

    ref_logits = reference_forward(params, input_ids, attention_mask)

    assert logits.shape == (B, CFG["num_labels"])
    assert bool(jnp.all(jnp.isfinite(logits)))
    assert bool(jnp.allclose(logits, ref_logits, atol=3e-2)), (logits, ref_logits)
    print("KERNEL_OK")
</pallas_src>

<mosaic_0001>
module attributes {stable_mosaic.version = 11 : i64} {
  func.func @_roberta_fwd_kernel(%arg0: memref<16x32xf32, #tpu.memory_space<vmem>>, %arg1: memref<16x16xf32, #tpu.memory_space<vmem>>, %arg2: memref<2x32x128xbf16, #tpu.memory_space<vmem>>, %arg3: memref<2x32x32xbf16, #tpu.memory_space<vmem>>, %arg4: memref<2x32x128xbf16, #tpu.memory_space<vmem>>, %arg5: memref<2x128x32xbf16, #tpu.memory_space<vmem>>, %arg6: memref<2x8x128xf32, #tpu.memory_space<vmem>>, %arg7: memref<8x128xf32, #tpu.memory_space<vmem>>, %arg8: memref<32x32xbf16, #tpu.memory_space<vmem>>, %arg9: memref<32x128xbf16, #tpu.memory_space<vmem>>, %arg10: memref<2x128xf32, #tpu.memory_space<vmem>>) attributes {dimension_semantics = [], scalar_prefetch = 0 : i64, scratch_operands = 0 : i64, tpu.core_type = #tpu.core_type<tc>} {
    %c0 = arith.constant 0 : index
    %c0_0 = arith.constant 0 : index
    %0 = vector.load %arg7[%c0, %c0_0] : memref<8x128xf32, #tpu.memory_space<vmem>>, vector<8x128xf32>
    %c0_1 = arith.constant 0 : index
    %c0_2 = arith.constant 0 : index
    %1 = vector.load %arg1[%c0_1, %c0_2] : memref<16x16xf32, #tpu.memory_space<vmem>>, vector<16x16xf32>
    %c0_3 = arith.constant 0 : index
    %c0_4 = arith.constant 0 : index
    %2 = vector.load %arg0[%c0_3, %c0_4] : memref<16x32xf32, #tpu.memory_space<vmem>>, vector<16x32xf32>
    %3 = vector.extract_strided_slice %0 {offsets = [0, 0], sizes = [1, 32], strides = [1, 1]} : vector<8x128xf32> to vector<1x32xf32>
    %4 = vector.extract_strided_slice %0 {offsets = [1, 0], sizes = [1, 32], strides = [1, 1]} : vector<8x128xf32> to vector<1x32xf32>
    %cst = arith.constant dense<0.000000e+00> : vector<16xf32>
    %5 = vector.multi_reduction <add>, %2, %cst [1] : vector<16x32xf32> to vector<16xf32>
    %6 = vector.shape_cast %5 : vector<16xf32> to vector<16x1xf32>
    %cst_5 = arith.constant 3.200000e+01 : f32
    %7 = vector.broadcast %cst_5 : f32 to vector<16x1xf32>
    %8 = arith.divf %6, %7 : vector<16x1xf32>
    %9 = vector.broadcast %8 : vector<16x1xf32> to vector<16x32xf32>
    %10 = arith.subf %2, %9 : vector<16x32xf32>
    %11 = arith.mulf %10, %10 : vector<16x32xf32>
    %cst_6 = arith.constant dense<0.000000e+00> : vector<16xf32>
    %12 = vector.multi_reduction <add>, %11, %cst_6 [1] : vector<16x32xf32> to vector<16xf32>
    %13 = vector.shape_cast %12 : vector<16xf32> to vector<16x1xf32>
    %cst_7 = arith.constant 3.200000e+01 : f32
    %14 = vector.broadcast %cst_7 : f32 to vector<16x1xf32>
    %15 = arith.divf %13, %14 : vector<16x1xf32>
    %cst_8 = arith.constant 9.99999974E-6 : f32
    %16 = vector.broadcast %cst_8 : f32 to vector<16x1xf32>
    %17 = arith.addf %15, %16 : vector<16x1xf32>
    %18 = math.rsqrt %17 : vector<16x1xf32>
    %19 = vector.broadcast %18 : vector<16x1xf32> to vector<16x32xf32>
    %20 = arith.mulf %10, %19 : vector<16x32xf32>
    %21 = vector.broadcast %3 : vector<1x32xf32> to vector<16x32xf32>
    %22 = arith.mulf %20, %21 : vector<16x32xf32>
    %23 = vector.broadcast %4 : vector<1x32xf32> to vector<16x32xf32>
    %24 = arith.addf %22, %23 : vector<16x32xf32>
    %c0_9 = arith.constant 0 : index
    %c0_10 = arith.constant 0 : index
    %c0_11 = arith.constant 0 : index
    %25 = vector.load %arg6[%c0_9, %c0_10, %c0_11] : memref<2x8x128xf32, #tpu.memory_space<vmem>>, vector<1x8x128xf32>
    %26 = vector.shape_cast %25 : vector<1x8x128xf32> to vector<8x128xf32>
    %27 = arith.truncf %24 : vector<16x32xf32> to vector<16x32xbf16>
    %c0_12 = arith.constant 0 : index
    %c0_13 = arith.constant 0 : index
    %c0_14 = arith.constant 0 : index
    %28 = vector.load %arg2[%c0_12, %c0_13, %c0_14] : memref<2x32x128xbf16, #tpu.memory_space<vmem>>, vector<1x32x128xbf16>
    %29 = vector.shape_cast %28 : vector<1x32x128xbf16> to vector<32x128xbf16>
    %cst_15 = arith.constant dense<0.000000e+00> : vector<16x128xf32>
    %30 = tpu.matmul %27, %29, %cst_15 {dimension_numbers = #tpu.dot_dimension_numbers<[1], [0], [0], [1], [0, 0, 1, 1], [], []>} : vector<16x32xbf16>, vector<32x128xbf16>, vector<16x128xf32> -> vector<16x128xf32>
    %31 = vector.extract_strided_slice %26 {offsets = [0, 0], sizes = [1, 128], strides = [1, 1]} : vector<8x128xf32> to vector<1x128xf32>
    %32 = vector.broadcast %31 : vector<1x128xf32> to vector<16x128xf32>
    %33 = arith.addf %30, %32 : vector<16x128xf32>
    %34 = arith.truncf %33 : vector<16x128xf32> to vector<16x128xbf16>
    %35 = vector.extract_strided_slice %34 {offsets = [0, 0], sizes = [16, 8], strides = [1, 1]} : vector<16x128xbf16> to vector<16x8xbf16>
    %36 = vector.extract_strided_slice %34 {offsets = [0, 8], sizes = [16, 8], strides = [1, 1]} : vector<16x128xbf16> to vector<16x8xbf16>
    %37 = vector.extract_strided_slice %34 {offsets = [0, 16], sizes = [16, 8], strides = [1, 1]} : vector<16x128xbf16> to vector<16x8xbf16>
    %38 = vector.extract_strided_slice %34 {offsets = [0, 24], sizes = [16, 8], strides = [1, 1]} : vector<16x128xbf16> to vector<16x8xbf16>
    %39 = vector.shape_cast %35 : vector<16x8xbf16> to vector<1x16x8xbf16>
    %40 = vector.shape_cast %36 : vector<16x8xbf16> to vector<1x16x8xbf16>
    %41 = vector.shape_cast %37 : vector<16x8xbf16> to vector<1x16x8xbf16>
    %42 = vector.shape_cast %38 : vector<16x8xbf16> to vector<1x16x8xbf16>
    %43 = tpu.concatenate %39, %40, %41, %42 in 0 : vector<1x16x8xbf16>, vector<1x16x8xbf16>, vector<1x16x8xbf16>, vector<1x16x8xbf16> -> vector<4x16x8xbf16>
    %44 = vector.extract_strided_slice %34 {offsets = [0, 32], sizes = [16, 8], strides = [1, 1]} : vector<16x128xbf16> to vector<16x8xbf16>
    %45 = vector.extract_strided_slice %34 {offsets = [0, 40], sizes = [16, 8], strides = [1, 1]} : vector<16x128xbf16> to vector<16x8xbf16>
    %46 = vector.extract_strided_slice %34 {offsets = [0, 48], sizes = [16, 8], strides = [1, 1]} : vector<16x128xbf16> to vector<16x8xbf16>
    %47 = vector.extract_strided_slice %34 {offsets = [0, 56], sizes = [16, 8], strides = [1, 1]} : vector<16x128xbf16> to vector<16x8xbf16>
    %48 = vector.shape_cast %44 : vector<16x8xbf16> to vector<1x16x8xbf16>
    %49 = vector.shape_cast %45 : vector<16x8xbf16> to vector<1x16x8xbf16>
    %50 = vector.shape_cast %46 : vector<16x8xbf16> to vector<1x16x8xbf16>
    %51 = vector.shape_cast %47 : vector<16x8xbf16> to vector<1x16x8xbf16>
    %52 = tpu.concatenate %48, %49, %50, %51 in 0 : vector<1x16x8xbf16>, vector<1x16x8xbf16>, vector<1x16x8xbf16>, vector<1x16x8xbf16> -> vector<4x16x8xbf16>
    %53 = vector.extract_strided_slice %34 {offsets = [0, 64], sizes = [16, 8], strides = [1, 1]} : vector<16x128xbf16> to vector<16x8xbf16>
    %54 = vector.extract_strided_slice %34 {offsets = [0, 72], sizes = [16, 8], strides = [1, 1]} : vector<16x128xbf16> to vector<16x8xbf16>
    %55 = vector.extract_strided_slice %34 {offsets = [0, 80], sizes = [16, 8], strides = [1, 1]} : vector<16x128xbf16> to vector<16x8xbf16>
    %56 = vector.extract_strided_slice %34 {offsets = [0, 88], sizes = [16, 8], strides = [1, 1]} : vector<16x128xbf16> to vector<16x8xbf16>
    %57 = vector.shape_cast %53 : vector<16x8xbf16> to vector<1x16x8xbf16>
    %58 = vector.shape_cast %54 : vector<16x8xbf16> to vector<1x16x8xbf16>
    %59 = vector.shape_cast %55 : vector<16x8xbf16> to vector<1x16x8xbf16>
    %60 = vector.shape_cast %56 : vector<16x8xbf16> to vector<1x16x8xbf16>
    %61 = tpu.concatenate %57, %58, %59, %60 in 0 : vector<1x16x8xbf16>, vector<1x16x8xbf16>, vector<1x16x8xbf16>, vector<1x16x8xbf16> -> vector<4x16x8xbf16>
    "tpu.trace_start"() <{level = 10 : i32, message = "hqd,hkd->hqk"}> : () -> ()
    %cst_16 = arith.constant dense<0.000000e+00> : vector<4x16x16xf32>
    %62 = tpu.matmul %43, %52, %cst_16 {dimension_numbers = #tpu.dot_dimension_numbers<[2], [2], [1], [1], [0, 0, 0, 1, 1, 1], [0], [0]>} : vector<4x16x8xbf16>, vector<4x16x8xbf16>, vector<4x16x16xf32> -> vector<4x16x16xf32>
    "tpu.trace_stop"() : () -> ()
    %63 = vector.shape_cast %1 : vector<16x16xf32> to vector<1x16x16xf32>
    %64 = vector.broadcast %63 : vector<1x16x16xf32> to vector<4x16x16xf32>
    %65 = arith.addf %62, %64 : vector<4x16x16xf32>
    %cst_17 = arith.constant dense<0xFF800000> : vector<4x16xf32>
    %66 = vector.multi_reduction <maximumf>, %65, %cst_17 [2] : vector<4x16x16xf32> to vector<4x16xf32>
    %67 = vector.shape_cast %66 : vector<4x16xf32> to vector<4x16x1xf32>
    %68 = vector.broadcast %67 : vector<4x16x1xf32> to vector<4x16x16xf32>
    %69 = arith.subf %65, %68 : vector<4x16x16xf32>
    %70 = math.exp %69 : vector<4x16x16xf32>
    %cst_18 = arith.constant dense<0.000000e+00> : vector<4x16xf32>
    %71 = vector.multi_reduction <add>, %70, %cst_18 [2] : vector<4x16x16xf32> to vector<4x16xf32>
    %72 = vector.shape_cast %71 : vector<4x16xf32> to vector<4x16x1xf32>
    %73 = tpu.reciprocal %72 {approx = true} : vector<4x16x1xf32> -> vector<4x16x1xf32>
    %74 = vector.broadcast %73 : vector<4x16x1xf32> to vector<4x16x16xf32>
    %75 = arith.mulf %70, %74 : vector<4x16x16xf32>
    %76 = arith.truncf %75 : vector<4x16x16xf32> to vector<4x16x16xbf16>
    "tpu.trace_start"() <{level = 10 : i32, message = "hqk,hkd->hqd"}> : () -> ()
    %cst_19 = arith.constant dense<0.000000e+00> : vector<4x16x8xf32>
    %77 = tpu.matmul %76, %61, %cst_19 {dimension_numbers = #tpu.dot_dimension_numbers<[2], [1], [1], [2], [0, 0, 0, 1, 1, 2], [0], [0]>} : vector<4x16x16xbf16>, vector<4x16x8xbf16>, vector<4x16x8xf32> -> vector<4x16x8xf32>
    "tpu.trace_stop"() : () -> ()
    %78 = vector.extract_strided_slice %77 {offsets = [0, 0, 0], sizes = [1, 16, 8], strides = [1, 1, 1]} : vector<4x16x8xf32> to vector<1x16x8xf32>
    %79 = vector.shape_cast %78 : vector<1x16x8xf32> to vector<16x8xf32>
    %80 = vector.extract_strided_slice %77 {offsets = [1, 0, 0], sizes = [1, 16, 8], strides = [1, 1, 1]} : vector<4x16x8xf32> to vector<1x16x8xf32>
    %81 = vector.shape_cast %80 : vector<1x16x8xf32> to vector<16x8xf32>
    %82 = vector.extract_strided_slice %77 {offsets = [2, 0, 0], sizes = [1, 16, 8], strides = [1, 1, 1]} : vector<4x16x8xf32> to vector<1x16x8xf32>
    %83 = vector.shape_cast %82 : vector<1x16x8xf32> to vector<16x8xf32>
    %84 = vector.extract_strided_slice %77 {offsets = [3, 0, 0], sizes = [1, 16, 8], strides = [1, 1, 1]} : vector<4x16x8xf32> to vector<1x16x8xf32>
    %85 = vector.shape_cast %84 : vector<1x16x8xf32> to vector<16x8xf32>
    %86 = tpu.concatenate %79, %81, %83, %85 in 1 : vector<16x8xf32>, vector<16x8xf32>, vector<16x8xf32>, vector<16x8xf32> -> vector<16x32xf32>
    %87 = arith.truncf %86 : vector<16x32xf32> to vector<16x32xbf16>
    %c0_20 = arith.constant 0 : index
    %c0_21 = arith.constant 0 : index
    %c0_22 = arith.constant 0 : index
    %88 = vector.load %arg3[%c0_20, %c0_21, %c0_22] : memref<2x32x32xbf16, #tpu.memory_space<vmem>>, vector<1x32x32xbf16>
    %89 = vector.shape_cast %88 : vector<1x32x32xbf16> to vector<32x32xbf16>
    %cst_23 = arith.constant dense<0.000000e+00> : vector<16x32xf32>
    %90 = tpu.matmul %87, %89, %cst_23 {dimension_numbers = #tpu.dot_dimension_numbers<[1], [0], [0], [1], [0, 0, 1, 1], [], []>} : vector<16x32xbf16>, vector<32x32xbf16>, vector<16x32xf32> -> vector<16x32xf32>
    %91 = vector.extract_strided_slice %26 {offsets = [1, 0], sizes = [1, 32], strides = [1, 1]} : vector<8x128xf32> to vector<1x32xf32>
    %92 = vector.broadcast %91 : vector<1x32xf32> to vector<16x32xf32>
    %93 = arith.addf %90, %92 : vector<16x32xf32>
    %94 = arith.addf %93, %24 : vector<16x32xf32>
    %95 = vector.extract_strided_slice %26 {offsets = [2, 0], sizes = [1, 32], strides = [1, 1]} : vector<8x128xf32> to vector<1x32xf32>
    %96 = vector.extract_strided_slice %26 {offsets = [3, 0], sizes = [1, 32], strides = [1, 1]} : vector<8x128xf32> to vector<1x32xf32>
    %cst_24 = arith.constant dense<0.000000e+00> : vector<16xf32>
    %97 = vector.multi_reduction <add>, %94, %cst_24 [1] : vector<16x32xf32> to vector<16xf32>
    %98 = vector.shape_cast %97 : vector<16xf32> to vector<16x1xf32>
    %cst_25 = arith.constant 3.200000e+01 : f32
    %99 = vector.broadcast %cst_25 : f32 to vector<16x1xf32>
    %100 = arith.divf %98, %99 : vector<16x1xf32>
    %101 = vector.broadcast %100 : vector<16x1xf32> to vector<16x32xf32>
    %102 = arith.subf %94, %101 : vector<16x32xf32>
    %103 = arith.mulf %102, %102 : vector<16x32xf32>
    %cst_26 = arith.constant dense<0.000000e+00> : vector<16xf32>
    %104 = vector.multi_reduction <add>, %103, %cst_26 [1] : vector<16x32xf32> to vector<16xf32>
    %105 = vector.shape_cast %104 : vector<16xf32> to vector<16x1xf32>
    %cst_27 = arith.constant 3.200000e+01 : f32
    %106 = vector.broadcast %cst_27 : f32 to vector<16x1xf32>
    %107 = arith.divf %105, %106 : vector<16x1xf32>
    %cst_28 = arith.constant 9.99999974E-6 : f32
    %108 = vector.broadcast %cst_28 : f32 to vector<16x1xf32>
    %109 = arith.addf %107, %108 : vector<16x1xf32>
    %110 = math.rsqrt %109 : vector<16x1xf32>
    %111 = vector.broadcast %110 : vector<16x1xf32> to vector<16x32xf32>
    %112 = arith.mulf %102, %111 : vector<16x32xf32>
    %113 = vector.broadcast %95 : vector<1x32xf32> to vector<16x32xf32>
    %114 = arith.mulf %112, %113 : vector<16x32xf32>
    %115 = vector.broadcast %96 : vector<1x32xf32> to vector<16x32xf32>
    %116 = arith.addf %114, %115 : vector<16x32xf32>
    %117 = arith.truncf %116 : vector<16x32xf32> to vector<16x32xbf16>
    %c0_29 = arith.constant 0 : index
    %c0_30 = arith.constant 0 : index
    %c0_31 = arith.constant 0 : index
    %118 = vector.load %arg4[%c0_29, %c0_30, %c0_31] : memref<2x32x128xbf16, #tpu.memory_space<vmem>>, vector<1x32x128xbf16>
    %119 = vector.shape_cast %118 : vector<1x32x128xbf16> to vector<32x128xbf16>
    %cst_32 = arith.constant dense<0.000000e+00> : vector<16x128xf32>
    %120 = tpu.matmul %117, %119, %cst_32 {dimension_numbers = #tpu.dot_dimension_numbers<[1], [0], [0], [1], [0, 0, 1, 1], [], []>} : vector<16x32xbf16>, vector<32x128xbf16>, vector<16x128xf32> -> vector<16x128xf32>
    %121 = vector.extract_strided_slice %26 {offsets = [4, 0], sizes = [1, 128], strides = [1, 1]} : vector<8x128xf32> to vector<1x128xf32>
    %122 = vector.broadcast %121 : vector<1x128xf32> to vector<16x128xf32>
    %123 = arith.addf %120, %122 : vector<16x128xf32>
    %cst_33 = arith.constant 5.000000e-01 : f32
    %124 = vector.broadcast %cst_33 : f32 to vector<16x128xf32>
    %125 = arith.mulf %124, %123 : vector<16x128xf32>
    %cst_34 = arith.constant 4.471500e-02 : f32
    %126 = vector.broadcast %cst_34 : f32 to vector<16x128xf32>
    %127 = arith.mulf %126, %123 : vector<16x128xf32>
    %128 = arith.mulf %127, %123 : vector<16x128xf32>
    %129 = arith.mulf %128, %123 : vector<16x128xf32>
    %130 = arith.addf %123, %129 : vector<16x128xf32>
    %cst_35 = arith.constant 0.797884583 : f32
    %131 = vector.broadcast %cst_35 : f32 to vector<16x128xf32>
    %132 = arith.mulf %131, %130 : vector<16x128xf32>
    %133 = math.tanh %132 : vector<16x128xf32>
    %cst_36 = arith.constant 1.000000e+00 : f32
    %134 = vector.broadcast %cst_36 : f32 to vector<16x128xf32>
    %135 = arith.addf %134, %133 : vector<16x128xf32>
    %136 = arith.mulf %125, %135 : vector<16x128xf32>
    %137 = arith.truncf %136 : vector<16x128xf32> to vector<16x128xbf16>
    %c0_37 = arith.constant 0 : index
    %c0_38 = arith.constant 0 : index
    %c0_39 = arith.constant 0 : index
    %138 = vector.load %arg5[%c0_37, %c0_38, %c0_39] : memref<2x128x32xbf16, #tpu.memory_space<vmem>>, vector<1x128x32xbf16>
    %139 = vector.shape_cast %138 : vector<1x128x32xbf16> to vector<128x32xbf16>
    %cst_40 = arith.constant dense<0.000000e+00> : vector<16x32xf32>
    %140 = tpu.matmul %137, %139, %cst_40 {dimension_numbers = #tpu.dot_dimension_numbers<[1], [0], [0], [1], [0, 0, 1, 1], [], []>} : vector<16x128xbf16>, vector<128x32xbf16>, vector<16x32xf32> -> vector<16x32xf32>
    %141 = vector.extract_strided_slice %26 {offsets = [5, 0], sizes = [1, 32], strides = [1, 1]} : vector<8x128xf32> to vector<1x32xf32>
    %142 = vector.broadcast %141 : vector<1x32xf32> to vector<16x32xf32>
    %143 = arith.addf %140, %142 : vector<16x32xf32>
    %144 = arith.addf %143, %116 : vector<16x32xf32>
    %145 = vector.extract_strided_slice %26 {offsets = [6, 0], sizes = [1, 32], strides = [1, 1]} : vector<8x128xf32> to vector<1x32xf32>
    %146 = vector.extract_strided_slice %26 {offsets = [7, 0], sizes = [1, 32], strides = [1, 1]} : vector<8x128xf32> to vector<1x32xf32>
    %cst_41 = arith.constant dense<0.000000e+00> : vector<16xf32>
    %147 = vector.multi_reduction <add>, %144, %cst_41 [1] : vector<16x32xf32> to vector<16xf32>
    %148 = vector.shape_cast %147 : vector<16xf32> to vector<16x1xf32>
    %cst_42 = arith.constant 3.200000e+01 : f32
    %149 = vector.broadcast %cst_42 : f32 to vector<16x1xf32>
    %150 = arith.divf %148, %149 : vector<16x1xf32>
    %151 = vector.broadcast %150 : vector<16x1xf32> to vector<16x32xf32>
    %152 = arith.subf %144, %151 : vector<16x32xf32>
    %153 = arith.mulf %152, %152 : vector<16x32xf32>
    %cst_43 = arith.constant dense<0.000000e+00> : vector<16xf32>
    %154 = vector.multi_reduction <add>, %153, %cst_43 [1] : vector<16x32xf32> to vector<16xf32>
    %155 = vector.shape_cast %154 : vector<16xf32> to vector<16x1xf32>
    %cst_44 = arith.constant 3.200000e+01 : f32
    %156 = vector.broadcast %cst_44 : f32 to vector<16x1xf32>
    %157 = arith.divf %155, %156 : vector<16x1xf32>
    %cst_45 = arith.constant 9.99999974E-6 : f32
    %158 = vector.broadcast %cst_45 : f32 to vector<16x1xf32>
    %159 = arith.addf %157, %158 : vector<16x1xf32>
    %160 = math.rsqrt %159 : vector<16x1xf32>
    %161 = vector.broadcast %160 : vector<16x1xf32> to vector<16x32xf32>
    %162 = arith.mulf %152, %161 : vector<16x32xf32>
    %163 = vector.broadcast %145 : vector<1x32xf32> to vector<16x32xf32>
    %164 = arith.mulf %162, %163 : vector<16x32xf32>
    %165 = vector.broadcast %146 : vector<1x32xf32> to vector<16x32xf32>
    %166 = arith.addf %164, %165 : vector<16x32xf32>
    %c1 = arith.constant 1 : index
    %c0_46 = arith.constant 0 : index
    %c0_47 = arith.constant 0 : index
    %167 = vector.load %arg6[%c1, %c0_46, %c0_47] : memref<2x8x128xf32, #tpu.memory_space<vmem>>, vector<1x8x128xf32>
    %168 = vector.shape_cast %167 : vector<1x8x128xf32> to vector<8x128xf32>
    %169 = arith.truncf %166 : vector<16x32xf32> to vector<16x32xbf16>
    %c1_48 = arith.constant 1 : index
    %c0_49 = arith.constant 0 : index
    %c0_50 = arith.constant 0 : index
    %170 = vector.load %arg2[%c1_48, %c0_49, %c0_50] : memref<2x32x128xbf16, #tpu.memory_space<vmem>>, vector<1x32x128xbf16>
    %171 = vector.shape_cast %170 : vector<1x32x128xbf16> to vector<32x128xbf16>
    %cst_51 = arith.constant dense<0.000000e+00> : vector<16x128xf32>
    %172 = tpu.matmul %169, %171, %cst_51 {dimension_numbers = #tpu.dot_dimension_numbers<[1], [0], [0], [1], [0, 0, 1, 1], [], []>} : vector<16x32xbf16>, vector<32x128xbf16>, vector<16x128xf32> -> vector<16x128xf32>
    %173 = vector.extract_strided_slice %168 {offsets = [0, 0], sizes = [1, 128], strides = [1, 1]} : vector<8x128xf32> to vector<1x128xf32>
    %174 = vector.broadcast %173 : vector<1x128xf32> to vector<16x128xf32>
    %175 = arith.addf %172, %174 : vector<16x128xf32>
    %176 = arith.truncf %175 : vector<16x128xf32> to vector<16x128xbf16>
    %177 = vector.extract_strided_slice %176 {offsets = [0, 0], sizes = [16, 8], strides = [1, 1]} : vector<16x128xbf16> to vector<16x8xbf16>
    %178 = vector.extract_strided_slice %176 {offsets = [0, 8], sizes = [16, 8], strides = [1, 1]} : vector<16x128xbf16> to vector<16x8xbf16>
    %179 = vector.extract_strided_slice %176 {offsets = [0, 16], sizes = [16, 8], strides = [1, 1]} : vector<16x128xbf16> to vector<16x8xbf16>
    %180 = vector.extract_strided_slice %176 {offsets = [0, 24], sizes = [16, 8], strides = [1, 1]} : vector<16x128xbf16> to vector<16x8xbf16>
    %181 = vector.shape_cast %177 : vector<16x8xbf16> to vector<1x16x8xbf16>
    %182 = vector.shape_cast %178 : vector<16x8xbf16> to vector<1x16x8xbf16>
    %183 = vector.shape_cast %179 : vector<16x8xbf16> to vector<1x16x8xbf16>
    %184 = vector.shape_cast %180 : vector<16x8xbf16> to vector<1x16x8xbf16>
    %185 = tpu.concatenate %181, %182, %183, %184 in 0 : vector<1x16x8xbf16>, vector<1x16x8xbf16>, vector<1x16x8xbf16>, vector<1x16x8xbf16> -> vector<4x16x8xbf16>
    %186 = vector.extract_strided_slice %176 {offsets = [0, 32], sizes = [16, 8], strides = [1, 1]} : vector<16x128xbf16> to vector<16x8xbf16>
    %187 = vector.extract_strided_slice %176 {offsets = [0, 40], sizes = [16, 8], strides = [1, 1]} : vector<16x128xbf16> to vector<16x8xbf16>
    %188 = vector.extract_strided_slice %176 {offsets = [0, 48], sizes = [16, 8], strides = [1, 1]} : vector<16x128xbf16> to vector<16x8xbf16>
    %189 = vector.extract_strided_slice %176 {offsets = [0, 56], sizes = [16, 8], strides = [1, 1]} : vector<16x128xbf16> to vector<16x8xbf16>
    %190 = vector.shape_cast %186 : vector<16x8xbf16> to vector<1x16x8xbf16>
    %191 = vector.shape_cast %187 : vector<16x8xbf16> to vector<1x16x8xbf16>
    %192 = vector.shape_cast %188 : vector<16x8xbf16> to vector<1x16x8xbf16>
    %193 = vector.shape_cast %189 : vector<16x8xbf16> to vector<1x16x8xbf16>
    %194 = tpu.concatenate %190, %191, %192, %193 in 0 : vector<1x16x8xbf16>, vector<1x16x8xbf16>, vector<1x16x8xbf16>, vector<1x16x8xbf16> -> vector<4x16x8xbf16>
    %195 = vector.extract_strided_slice %176 {offsets = [0, 64], sizes = [16, 8], strides = [1, 1]} : vector<16x128xbf16> to vector<16x8xbf16>
    %196 = vector.extract_strided_slice %176 {offsets = [0, 72], sizes = [16, 8], strides = [1, 1]} : vector<16x128xbf16> to vector<16x8xbf16>
    %197 = vector.extract_strided_slice %176 {offsets = [0, 80], sizes = [16, 8], strides = [1, 1]} : vector<16x128xbf16> to vector<16x8xbf16>
    %198 = vector.extract_strided_slice %176 {offsets = [0, 88], sizes = [16, 8], strides = [1, 1]} : vector<16x128xbf16> to vector<16x8xbf16>
    %199 = vector.shape_cast %195 : vector<16x8xbf16> to vector<1x16x8xbf16>
    %200 = vector.shape_cast %196 : vector<16x8xbf16> to vector<1x16x8xbf16>
    %201 = vector.shape_cast %197 : vector<16x8xbf16> to vector<1x16x8xbf16>
    %202 = vector.shape_cast %198 : vector<16x8xbf16> to vector<1x16x8xbf16>
    %203 = tpu.concatenate %199, %200, %201, %202 in 0 : vector<1x16x8xbf16>, vector<1x16x8xbf16>, vector<1x16x8xbf16>, vector<1x16x8xbf16> -> vector<4x16x8xbf16>
    "tpu.trace_start"() <{level = 10 : i32, message = "hqd,hkd->hqk"}> : () -> ()
    %cst_52 = arith.constant dense<0.000000e+00> : vector<4x16x16xf32>
    %204 = tpu.matmul %185, %194, %cst_52 {dimension_numbers = #tpu.dot_dimension_numbers<[2], [2], [1], [1], [0, 0, 0, 1, 1, 1], [0], [0]>} : vector<4x16x8xbf16>, vector<4x16x8xbf16>, vector<4x16x16xf32> -> vector<4x16x16xf32>
    "tpu.trace_stop"() : () -> ()
    %205 = vector.shape_cast %1 : vector<16x16xf32> to vector<1x16x16xf32>
    %206 = vector.broadcast %205 : vector<1x16x16xf32> to vector<4x16x16xf32>
    %207 = arith.addf %204, %206 : vector<4x16x16xf32>
    %cst_53 = arith.constant dense<0xFF800000> : vector<4x16xf32>
    %208 = vector.multi_reduction <maximumf>, %207, %cst_53 [2] : vector<4x16x16xf32> to vector<4x16xf32>
    %209 = vector.shape_cast %208 : vector<4x16xf32> to vector<4x16x1xf32>
    %210 = vector.broadcast %209 : vector<4x16x1xf32> to vector<4x16x16xf32>
    %211 = arith.subf %207, %210 : vector<4x16x16xf32>
    %212 = math.exp %211 : vector<4x16x16xf32>
    %cst_54 = arith.constant dense<0.000000e+00> : vector<4x16xf32>
    %213 = vector.multi_reduction <add>, %212, %cst_54 [2] : vector<4x16x16xf32> to vector<4x16xf32>
    %214 = vector.shape_cast %213 : vector<4x16xf32> to vector<4x16x1xf32>
    %215 = tpu.reciprocal %214 {approx = true} : vector<4x16x1xf32> -> vector<4x16x1xf32>
    %216 = vector.broadcast %215 : vector<4x16x1xf32> to vector<4x16x16xf32>
    %217 = arith.mulf %212, %216 : vector<4x16x16xf32>
    %218 = arith.truncf %217 : vector<4x16x16xf32> to vector<4x16x16xbf16>
    "tpu.trace_start"() <{level = 10 : i32, message = "hqk,hkd->hqd"}> : () -> ()
    %cst_55 = arith.constant dense<0.000000e+00> : vector<4x16x8xf32>
    %219 = tpu.matmul %218, %203, %cst_55 {dimension_numbers = #tpu.dot_dimension_numbers<[2], [1], [1], [2], [0, 0, 0, 1, 1, 2], [0], [0]>} : vector<4x16x16xbf16>, vector<4x16x8xbf16>, vector<4x16x8xf32> -> vector<4x16x8xf32>
    "tpu.trace_stop"() : () -> ()
    %220 = vector.extract_strided_slice %219 {offsets = [0, 0, 0], sizes = [1, 16, 8], strides = [1, 1, 1]} : vector<4x16x8xf32> to vector<1x16x8xf32>
    %221 = vector.shape_cast %220 : vector<1x16x8xf32> to vector<16x8xf32>
    %222 = vector.extract_strided_slice %219 {offsets = [1, 0, 0], sizes = [1, 16, 8], strides = [1, 1, 1]} : vector<4x16x8xf32> to vector<1x16x8xf32>
    %223 = vector.shape_cast %222 : vector<1x16x8xf32> to vector<16x8xf32>
    %224 = vector.extract_strided_slice %219 {offsets = [2, 0, 0], sizes = [1, 16, 8], strides = [1, 1, 1]} : vector<4x16x8xf32> to vector<1x16x8xf32>
    %225 = vector.shape_cast %224 : vector<1x16x8xf32> to vector<16x8xf32>
    %226 = vector.extract_strided_slice %219 {offsets = [3, 0, 0], sizes = [1, 16, 8], strides = [1, 1, 1]} : vector<4x16x8xf32> to vector<1x16x8xf32>
    %227 = vector.shape_cast %226 : vector<1x16x8xf32> to vector<16x8xf32>
    %228 = tpu.concatenate %221, %223, %225, %227 in 1 : vector<16x8xf32>, vector<16x8xf32>, vector<16x8xf32>, vector<16x8xf32> -> vector<16x32xf32>
    %229 = arith.truncf %228 : vector<16x32xf32> to vector<16x32xbf16>
    %c1_56 = arith.constant 1 : index
    %c0_57 = arith.constant 0 : index
    %c0_58 = arith.constant 0 : index
    %230 = vector.load %arg3[%c1_56, %c0_57, %c0_58] : memref<2x32x32xbf16, #tpu.memory_space<vmem>>, vector<1x32x32xbf16>
    %231 = vector.shape_cast %230 : vector<1x32x32xbf16> to vector<32x32xbf16>
    %cst_59 = arith.constant dense<0.000000e+00> : vector<16x32xf32>
    %232 = tpu.matmul %229, %231, %cst_59 {dimension_numbers = #tpu.dot_dimension_numbers<[1], [0], [0], [1], [0, 0, 1, 1], [], []>} : vector<16x32xbf16>, vector<32x32xbf16>, vector<16x32xf32> -> vector<16x32xf32>
    %233 = vector.extract_strided_slice %168 {offsets = [1, 0], sizes = [1, 32], strides = [1, 1]} : vector<8x128xf32> to vector<1x32xf32>
    %234 = vector.broadcast %233 : vector<1x32xf32> to vector<16x32xf32>
    %235 = arith.addf %232, %234 : vector<16x32xf32>
    %236 = arith.addf %235, %166 : vector<16x32xf32>
    %237 = vector.extract_strided_slice %168 {offsets = [2, 0], sizes = [1, 32], strides = [1, 1]} : vector<8x128xf32> to vector<1x32xf32>
    %238 = vector.extract_strided_slice %168 {offsets = [3, 0], sizes = [1, 32], strides = [1, 1]} : vector<8x128xf32> to vector<1x32xf32>
    %cst_60 = arith.constant dense<0.000000e+00> : vector<16xf32>
    %239 = vector.multi_reduction <add>, %236, %cst_60 [1] : vector<16x32xf32> to vector<16xf32>
    %240 = vector.shape_cast %239 : vector<16xf32> to vector<16x1xf32>
    %cst_61 = arith.constant 3.200000e+01 : f32
    %241 = vector.broadcast %cst_61 : f32 to vector<16x1xf32>
    %242 = arith.divf %240, %241 : vector<16x1xf32>
    %243 = vector.broadcast %242 : vector<16x1xf32> to vector<16x32xf32>
    %244 = arith.subf %236, %243 : vector<16x32xf32>
    %245 = arith.mulf %244, %244 : vector<16x32xf32>
    %cst_62 = arith.constant dense<0.000000e+00> : vector<16xf32>
    %246 = vector.multi_reduction <add>, %245, %cst_62 [1] : vector<16x32xf32> to vector<16xf32>
    %247 = vector.shape_cast %246 : vector<16xf32> to vector<16x1xf32>
    %cst_63 = arith.constant 3.200000e+01 : f32
    %248 = vector.broadcast %cst_63 : f32 to vector<16x1xf32>
    %249 = arith.divf %247, %248 : vector<16x1xf32>
    %cst_64 = arith.constant 9.99999974E-6 : f32
    %250 = vector.broadcast %cst_64 : f32 to vector<16x1xf32>
    %251 = arith.addf %249, %250 : vector<16x1xf32>
    %252 = math.rsqrt %251 : vector<16x1xf32>
    %253 = vector.broadcast %252 : vector<16x1xf32> to vector<16x32xf32>
    %254 = arith.mulf %244, %253 : vector<16x32xf32>
    %255 = vector.broadcast %237 : vector<1x32xf32> to vector<16x32xf32>
    %256 = arith.mulf %254, %255 : vector<16x32xf32>
    %257 = vector.broadcast %238 : vector<1x32xf32> to vector<16x32xf32>
    %258 = arith.addf %256, %257 : vector<16x32xf32>
    %259 = arith.truncf %258 : vector<16x32xf32> to vector<16x32xbf16>
    %c1_65 = arith.constant 1 : index
    %c0_66 = arith.constant 0 : index
    %c0_67 = arith.constant 0 : index
    %260 = vector.load %arg4[%c1_65, %c0_66, %c0_67] : memref<2x32x128xbf16, #tpu.memory_space<vmem>>, vector<1x32x128xbf16>
    %261 = vector.shape_cast %260 : vector<1x32x128xbf16> to vector<32x128xbf16>
    %cst_68 = arith.constant dense<0.000000e+00> : vector<16x128xf32>
    %262 = tpu.matmul %259, %261, %cst_68 {dimension_numbers = #tpu.dot_dimension_numbers<[1], [0], [0], [1], [0, 0, 1, 1], [], []>} : vector<16x32xbf16>, vector<32x128xbf16>, vector<16x128xf32> -> vector<16x128xf32>
    %263 = vector.extract_strided_slice %168 {offsets = [4, 0], sizes = [1, 128], strides = [1, 1]} : vector<8x128xf32> to vector<1x128xf32>
    %264 = vector.broadcast %263 : vector<1x128xf32> to vector<16x128xf32>
    %265 = arith.addf %262, %264 : vector<16x128xf32>
    %cst_69 = arith.constant 5.000000e-01 : f32
    %266 = vector.broadcast %cst_69 : f32 to vector<16x128xf32>
    %267 = arith.mulf %266, %265 : vector<16x128xf32>
    %cst_70 = arith.constant 4.471500e-02 : f32
    %268 = vector.broadcast %cst_70 : f32 to vector<16x128xf32>
    %269 = arith.mulf %268, %265 : vector<16x128xf32>
    %270 = arith.mulf %269, %265 : vector<16x128xf32>
    %271 = arith.mulf %270, %265 : vector<16x128xf32>
    %272 = arith.addf %265, %271 : vector<16x128xf32>
    %cst_71 = arith.constant 0.797884583 : f32
    %273 = vector.broadcast %cst_71 : f32 to vector<16x128xf32>
    %274 = arith.mulf %273, %272 : vector<16x128xf32>
    %275 = math.tanh %274 : vector<16x128xf32>
    %cst_72 = arith.constant 1.000000e+00 : f32
    %276 = vector.broadcast %cst_72 : f32 to vector<16x128xf32>
    %277 = arith.addf %276, %275 : vector<16x128xf32>
    %278 = arith.mulf %267, %277 : vector<16x128xf32>
    %279 = arith.truncf %278 : vector<16x128xf32> to vector<16x128xbf16>
    %c1_73 = arith.constant 1 : index
    %c0_74 = arith.constant 0 : index
    %c0_75 = arith.constant 0 : index
    %280 = vector.load %arg5[%c1_73, %c0_74, %c0_75] : memref<2x128x32xbf16, #tpu.memory_space<vmem>>, vector<1x128x32xbf16>
    %281 = vector.shape_cast %280 : vector<1x128x32xbf16> to vector<128x32xbf16>
    %cst_76 = arith.constant dense<0.000000e+00> : vector<16x32xf32>
    %282 = tpu.matmul %279, %281, %cst_76 {dimension_numbers = #tpu.dot_dimension_numbers<[1], [0], [0], [1], [0, 0, 1, 1], [], []>} : vector<16x128xbf16>, vector<128x32xbf16>, vector<16x32xf32> -> vector<16x32xf32>
    %283 = vector.extract_strided_slice %168 {offsets = [5, 0], sizes = [1, 32], strides = [1, 1]} : vector<8x128xf32> to vector<1x32xf32>
    %284 = vector.broadcast %283 : vector<1x32xf32> to vector<16x32xf32>
    %285 = arith.addf %282, %284 : vector<16x32xf32>
    %286 = arith.addf %285, %258 : vector<16x32xf32>
    %287 = vector.extract_strided_slice %168 {offsets = [6, 0], sizes = [1, 32], strides = [1, 1]} : vector<8x128xf32> to vector<1x32xf32>
    %288 = vector.extract_strided_slice %168 {offsets = [7, 0], sizes = [1, 32], strides = [1, 1]} : vector<8x128xf32> to vector<1x32xf32>
    %cst_77 = arith.constant dense<0.000000e+00> : vector<16xf32>
    %289 = vector.multi_reduction <add>, %286, %cst_77 [1] : vector<16x32xf32> to vector<16xf32>
    %290 = vector.shape_cast %289 : vector<16xf32> to vector<16x1xf32>
    %cst_78 = arith.constant 3.200000e+01 : f32
    %291 = vector.broadcast %cst_78 : f32 to vector<16x1xf32>
    %292 = arith.divf %290, %291 : vector<16x1xf32>
    %293 = vector.broadcast %292 : vector<16x1xf32> to vector<16x32xf32>
    %294 = arith.subf %286, %293 : vector<16x32xf32>
    %295 = arith.mulf %294, %294 : vector<16x32xf32>
    %cst_79 = arith.constant dense<0.000000e+00> : vector<16xf32>
    %296 = vector.multi_reduction <add>, %295, %cst_79 [1] : vector<16x32xf32> to vector<16xf32>
    %297 = vector.shape_cast %296 : vector<16xf32> to vector<16x1xf32>
    %cst_80 = arith.constant 3.200000e+01 : f32
    %298 = vector.broadcast %cst_80 : f32 to vector<16x1xf32>
    %299 = arith.divf %297, %298 : vector<16x1xf32>
    %cst_81 = arith.constant 9.99999974E-6 : f32
    %300 = vector.broadcast %cst_81 : f32 to vector<16x1xf32>
    %301 = arith.addf %299, %300 : vector<16x1xf32>
    %302 = math.rsqrt %301 : vector<16x1xf32>
    %303 = vector.broadcast %302 : vector<16x1xf32> to vector<16x32xf32>
    %304 = arith.mulf %294, %303 : vector<16x32xf32>
    %305 = vector.broadcast %287 : vector<1x32xf32> to vector<16x32xf32>
    %306 = arith.mulf %304, %305 : vector<16x32xf32>
    %307 = vector.broadcast %288 : vector<1x32xf32> to vector<16x32xf32>
    %308 = arith.addf %306, %307 : vector<16x32xf32>
    %309 = vector.extract_strided_slice %308 {offsets = [0, 0], sizes = [1, 32], strides = [1, 1]} : vector<16x32xf32> to vector<1x32xf32>
    %310 = vector.extract_strided_slice %308 {offsets = [8, 0], sizes = [1, 32], strides = [1, 1]} : vector<16x32xf32> to vector<1x32xf32>
    %311 = tpu.concatenate %309, %310 in 0 : vector<1x32xf32>, vector<1x32xf32> -> vector<2x32xf32>
    %312 = arith.truncf %311 : vector<2x32xf32> to vector<2x32xbf16>
    %c0_82 = arith.constant 0 : index
    %c0_83 = arith.constant 0 : index
    %313 = vector.load %arg8[%c0_82, %c0_83] : memref<32x32xbf16, #tpu.memory_space<vmem>>, vector<32x32xbf16>
    %cst_84 = arith.constant dense<0.000000e+00> : vector<2x32xf32>
    %314 = tpu.matmul %312, %313, %cst_84 {dimension_numbers = #tpu.dot_dimension_numbers<[1], [0], [0], [1], [0, 0, 1, 1], [], []>} : vector<2x32xbf16>, vector<32x32xbf16>, vector<2x32xf32> -> vector<2x32xf32>
    %315 = vector.extract_strided_slice %0 {offsets = [2, 0], sizes = [1, 32], strides = [1, 1]} : vector<8x128xf32> to vector<1x32xf32>
    %316 = vector.broadcast %315 : vector<1x32xf32> to vector<2x32xf32>
    %317 = arith.addf %314, %316 : vector<2x32xf32>
    %318 = math.tanh %317 : vector<2x32xf32>
    %319 = arith.truncf %318 : vector<2x32xf32> to vector<2x32xbf16>
    %c0_85 = arith.constant 0 : index
    %c0_86 = arith.constant 0 : index
    %320 = vector.load %arg9[%c0_85, %c0_86] : memref<32x128xbf16, #tpu.memory_space<vmem>>, vector<32x128xbf16>
    %cst_87 = arith.constant dense<0.000000e+00> : vector<2x128xf32>
    %321 = tpu.matmul %319, %320, %cst_87 {dimension_numbers = #tpu.dot_dimension_numbers<[1], [0], [0], [1], [0, 0, 1, 1], [], []>} : vector<2x32xbf16>, vector<32x128xbf16>, vector<2x128xf32> -> vector<2x128xf32>
    %322 = vector.extract_strided_slice %0 {offsets = [3, 0], sizes = [1, 128], strides = [1, 1]} : vector<8x128xf32> to vector<1x128xf32>
    %323 = vector.broadcast %322 : vector<1x128xf32> to vector<2x128xf32>
    %324 = arith.addf %321, %323 : vector<2x128xf32>
    %c0_88 = arith.constant 0 : index
    %c0_89 = arith.constant 0 : index
    %325 = vector.load %arg10[%c0_88, %c0_89] : memref<2x128xf32, #tpu.memory_space<vmem>>, vector<2x128xf32>
    tpu.vector_store %arg10[%c0_88, %c0_89], %324 {strides = array<i32>} : memref<2x128xf32, #tpu.memory_space<vmem>>, vector<2x128xf32>,
    return
  }
}

</mosaic_0001>

<bundles_post_ra>
// kernel: _lambda_.1
= control target key start
LH: loop header
LB: loop body
LE: loop exit
PB: predicated region body
PF: predicated region fallthrough
CT: control target
= control target key end

     0   :  { %vm42_vm0 = vcmask 261120   ;;  %s2339_s0 = inlined_call_operand.vmem [shape: f32[16,32], index: 0, kind: input, shape index: {}]   ;;  %s2340_s1 = inlined_call_operand.vmem [shape: f32[16,16], index: 1, kind: input, shape index: {}]   ;;  %s2341_s2 = inlined_call_operand.vmem [shape: bf16[2,32,128], index: 2, kind: input, shape index: {}]   ;;  %s2342_s3 = inlined_call_operand.vmem [shape: bf16[2,32,32], index: 3, kind: input, shape index: {}]   ;;  %s2343_s4 = inlined_call_operand.vmem [shape: bf16[2,32,128], index: 4, kind: input, shape index: {}]   ;;  %s2344_s5 = inlined_call_operand.vmem [shape: bf16[2,128,32], index: 5, kind: input, shape index: {}]   ;;  %s2345_s6 = inlined_call_operand.vmem [shape: f32[2,8,128], index: 6, kind: input, shape index: {}]   ;;  %s2346_s7 = inlined_call_operand.vmem [shape: f32[8,128], index: 7, kind: input, shape index: {}]   ;;  %s2347_s8 = inlined_call_operand.vmem [shape: bf16[32,32], index: 8, kind: input, shape index: {}]   ;;  %s2348_s9 = inlined_call_operand.vmem [shape: bf16[32,128], index: 9, kind: input, shape index: {}]   ;;  %s2349_s10 = inlined_call_operand.hbm [shape: f32[2,128], index: 10, kind: output, shape index: {}]  }
   0x1   :  { %v40_v0 = vld [vmem:[%s2339_s0] sm:$0xff] }
   0x2   :  { %15 = vsyncpa [#allocation3], 0  ;;  %v43_v1 = vsel %vm42_vm0, %v40_v0, 0.0  ;;  %v41_v2 = vld [vmem:[%s2339_s0 + $0x8] sm:$0xff]  ;;  %v1875_v4 = vmov 32.0   ;;  %v1680_v23 = vld [vmem:[%s2341_s2] sm:$0xff] }
   0x3   :  { %44 = vadd.xlane.f32.xlu0 %v43_v1  ;;  %v46_v3 = vsel %vm42_vm0, %v41_v2, 0.0  ;;  %1752 = vrcp.f32 %v1875_v4  ;;  %v1681_v21 = vld [vmem:[%s2341_s2 + $0x8] sm:$0xff]  ;;  %v37_v40 = vld [vmem:[%s2346_s7] sm:$0xff]  ;;  %s1876_s24 = smov 112   ;;  %s1877_s25 = smov 120   ;;  %vm157_vm8 = vcmask 64512  }
   0x4   :  { %128 = vmatpush.bf16.msra.mxu3 %v1681_v21  ;;  %v94_v43 = vperm.slane %v37_v40, 0  ;;  %v97_v48 = vperm.slane %v37_v40, 1  ;;  %v1975_v53 = vld [vmem:[%s2345_s6] sm:$0xff]  ;;  %s1878_s26 = smov 104   ;;  %s1879_s27 = smov 96   ;;  %vm253_vm9 = vcmask 130048  }
   0x5   :  { %v106_v54 = vperm.slane %v1975_v53, 0  ;;  %s1881_s12 = smov 8   ;;  %s1882_s13 = smov 16   ;;  %vm478_vm10 = vcmask 195584  }
   0x6   :  { %s1883_s14 = smov 24  }
   0x8   :  { %129 = vmatpush.bf16.msra.mxu3 %v1680_v23 }
   0x9   :  { %v1753_v5 = vpop.eup %1752 }
   0xa   :  { %v50_v6 = vmul.f32 32.0, %v1753_v5  ;;  %vm54_vm1 = vweird.f32 %v1753_v5 }
   0xb   :  { %47 = vadd.xlane.f32.xlu0 %v46_v3 }
   0xc   :  { %v51_v7 = vsub.f32 1.0, %v50_v6 }
   0xe   :  { %v52_v8 = vmul.f32 %v1753_v5, %v51_v7 }
  0x10   :  { %v53_v9 = vadd.f32 %v1753_v5, %v52_v8 }
  0x12   :  { %v1948_v10 = vsel %vm54_vm1, %v1753_v5, %v53_v9 }
  0x76   :  { %v45_v11 = vpop.xlane.xlu0 %44 }
  0x77   :  { %v56_v12 = vmul.f32 %v1948_v10, %v45_v11 }
  0x79   :  { %v58_v13 = vsub.f32 %v40_v0, %v56_v12 }
  0x7b   :  { %v60_v14 = vmul.f32 %v58_v13, %v58_v13 }
  0x7d   :  { %v62_v15 = vsel %vm42_vm0, %v60_v14, 0.0 }
  0x7e   :  { %63 = vadd.xlane.f32.xlu1 %v62_v15  ;;  %v48_v16 = vpop.xlane.xlu0 %47 }
  0x7f   :  { %v57_v17 = vmul.f32 %v1948_v10, %v48_v16 }
  0x81   :  { %v59_v18 = vsub.f32 %v41_v2, %v57_v17 }
  0x83   :  { %v61_v19 = vmul.f32 %v59_v18, %v59_v18 }
  0x85   :  { %v65_v20 = vsel %vm42_vm0, %v61_v19, 0.0 }
  0x86   :  { %66 = vadd.xlane.f32.xlu1 %v65_v20 }
  0xf1   :  { %v64_v22 = vpop.xlane.xlu1 %63 }
  0xf2   :  { %v68_v24 = vmul.f32 %v64_v22, %v1948_v10 }
  0xf4   :  { %v70_v25 = vadd.f32 1e-05, %v68_v24  ;;  %v2015_v24 = vld [vmem:[%s2340_s1] sm:$0xff] }
  0xf6   :  { %1754 = vrsqrt.f32 %v70_v25  ;;  %vm78_vm3 = vweird.f32 %v70_v25 }
  0xf9   :  { %v67_v26 = vpop.xlane.xlu1 %66 }
  0xfa   :  { %v69_v27 = vmul.f32 %v67_v26, %v1948_v10 }
  0xfc   :  { %v1755_v28 = vpop.eup %1754  ;;  %v71_v29 = vadd.f32 1e-05, %v69_v27 }
  0xfd   :  { %v73_v30 = vmul.f32 %v1755_v28, %v70_v25  ;;  %vm79_vm2 = vweird.f32 %v1755_v28 }
  0xfe   :  { %1756 = vrsqrt.f32 %v71_v29  ;;  %vm80_vm4 = vmor %vm78_vm3, %vm79_vm2  ;;  %vm88_vm6 = vweird.f32 %v71_v29 }
  0xff   :  { %v74_v31 = vmul.f32 %v1755_v28, %v73_v30 }
 0x101   :  { %v75_v32 = vmul.f32 0.5, %v74_v31 }
 0x103   :  { %v76_v33 = vsub.f32 1.5, %v75_v32 }
 0x104   :  { %v1757_v34 = vpop.eup %1756 }
 0x105   :  { %v77_v35 = vmul.f32 %v1755_v28, %v76_v33  ;;  %v83_v36 = vmul.f32 %v1757_v34, %v71_v29  ;;  %vm89_vm5 = vweird.f32 %v1757_v34 }
 0x106   :  { %vm90_vm7 = vmor %vm88_vm6, %vm89_vm5 }
 0x107   :  { %v84_v37 = vmul.f32 %v1757_v34, %v83_v36  ;;  %v81_v38 = vsel %vm80_vm4, %v1755_v28, %v77_v35  ;;  %v2022_v28 = vld [vmem:[%s2340_s1 + $0x8] sm:$0xff]  ;;  %s1880_s1 = smov 64  }
 0x108   :  { %v92_v42 = vmul.f32 %v81_v38, %v58_v13 }
 0x109   :  { %v85_v39 = vmul.f32 0.5, %v84_v37 }
 0x10a   :  { %v95_v47 = vmul.f32 %v94_v43, %v92_v42 }
 0x10b   :  { %v86_v41 = vsub.f32 1.5, %v85_v39 }
 0x10c   :  { %v1965_v50 = vadd.f32 %v97_v48, %v95_v47 }
 0x10d   :  { %v87_v44 = vmul.f32 %v1757_v34, %v86_v41 }
 0x10f   :  { %v91_v45 = vsel %vm90_vm7, %v1757_v34, %v87_v44 }
 0x110   :  { %v93_v46 = vmul.f32 %v91_v45, %v59_v18 }
 0x112   :  { %v96_v49 = vmul.f32 %v94_v43, %v93_v46 }
 0x114   :  { %v1967_v51 = vadd.f32 %v97_v48, %v96_v49 }
 0x116   :  { %v101_v52 = vpack.c.bf16 %v1967_v51, %v1965_v50 }
 0x118   :  { %1507 = vmatmul.msk.bf16.vlgmr.msra.gmra.mxu3 %vm42_vm0, %v101_v52 }
 0x19b   :  { %v131_v55 = vpop.f32.mrf.mxu3 }
 0x19c   :  { %v132_v56 = vadd.f32 %v131_v55, %v106_v54 }
 0x19e   :  { %v136_v57 = vpack.c.bf16 %v132_v56, %v132_v56 }
 0x1a0   :  { %144 = vrot.lane.b32.xlu0 %v136_v57, %s1876_s24  ;;  %140 = vrot.lane.b32.xlu2 %v136_v57, %s1877_s25  ;;  %v152_v62 = vunpack.c.l.b16 %v136_v57 }
 0x1a3   :  { %v133_v58 = vpop.f32.mrf.mxu3 }
 0x1a4   :  { %v134_v59 = vadd.f32 %v133_v58, %v106_v54 }
 0x1a6   :  { %v137_v60 = vpack.c.bf16 %v134_v59, %v134_v59 }
 0x1a8   :  { %146 = vrot.lane.b32.xlu1 %v137_v60, %s1876_s24  ;;  %142 = vrot.lane.b32.xlu2 %v137_v60, %s1877_s25  ;;  %v153_v61 = vunpack.c.l.b16 %v137_v60 }
 0x1aa   :  { %v1982_v63 = vpack.c.b16 %v153_v61, %v152_v62 }
 0x1b0   :  { %148 = vrot.lane.b32.xlu2 %v136_v57, %s1878_s26  ;;  %155 = vrot.lane.b32.xlu1 %v1982_v63, %s1879_s27 }
 0x1b8   :  { %150 = vrot.lane.b32.xlu2 %v137_v60, %s1878_s26 }
 0x1fa   :  { %v141_v0 = vpop.permute.xlu2 %140 }
 0x1fb   :  { %v178_v2 = vunpack.c.l.b16 %v141_v0 }
 0x202   :  { %v143_v1 = vpop.permute.xlu2 %142 }
 0x203   :  { %v179_v3 = vunpack.c.l.b16 %v143_v1 }
 0x205   :  { %v1988_v4 = vpack.c.b16 %v179_v3, %v178_v2 }
 0x207   :  { %181 = vrot.lane.b32.xlu2 %v1988_v4, %s1879_s27 }
 0x20a   :  { %v149_v5 = vpop.permute.xlu2 %148 }
 0x20b   :  { %v228_v7 = vunpack.c.l.b16 %v149_v5 }
 0x212   :  { %v151_v6 = vpop.permute.xlu2 %150  ;;  %v145_v11 = vpop.permute.xlu0 %144 }
 0x213   :  { %v229_v8 = vunpack.c.l.b16 %v151_v6  ;;  %v203_v13 = vunpack.c.l.b16 %v145_v11 }
 0x215   :  { %v1992_v9 = vpack.c.b16 %v229_v8, %v228_v7 }
 0x217   :  { %231 = vrot.lane.b32.xlu2 %v1992_v9, %s1879_s27 }
 0x21a   :  { %v147_v12 = vpop.permute.xlu1 %146 }
 0x21b   :  { %v204_v14 = vunpack.c.l.b16 %v147_v12 }
 0x21d   :  { %v1996_v15 = vpack.c.b16 %v204_v14, %v203_v13 }
 0x21f   :  { %206 = vrot.lane.b32.xlu0 %v1996_v15, %s1879_s27 }
 0x222   :  { %v156_v16 = vpop.permute.xlu1 %155 }
 0x223   :  { %v162_v17 = vsel %vm157_vm8, %v156_v16, 0 }
 0x224   :  { %171 = vmatpush.bf16.xpose.msra.mxu1 %v162_v17 }
 0x22b   :  { %1508 = vmatmul.msk.bf16.vlgmr.msra.gmra.mxu1 %vm157_vm8, %v1982_v63 }
 0x261   :  { %v182_v18 = vpop.permute.xlu2 %181 }
 0x262   :  { %v187_v19 = vsel %vm157_vm8, %v182_v18, 0 }
 0x263   :  { %196 = vmatpush.bf16.xpose.msra.mxu2 %v187_v19 }
 0x26a   :  { %1509 = vmatmul.msk.bf16.vlgmr.msra.gmra.mxu2 %vm157_vm8, %v1988_v4 }
 0x271   :  { %v232_v20 = vpop.permute.xlu2 %231 }
 0x272   :  { %v237_v21 = vsel %vm157_vm8, %v232_v20, 0 }
 0x273   :  { %246 = vmatpush.bf16.xpose.msra.mxu0 %v237_v21 }
 0x27a   :  { %1511 = vmatmul.msk.bf16.vlgmr.msra.gmra.mxu0 %vm157_vm8, %v1992_v9 }
 0x291   :  { %v207_v22 = vpop.permute.xlu0 %206 }
 0x292   :  { %v212_v23 = vsel %vm157_vm8, %v207_v22, 0 }
 0x293   :  { %221 = vmatpush.bf16.xpose.msrb.mxu3 %v212_v23 }
 0x29a   :  { %1510 = vmatmul.msk.bf16.vlgmr.msrb.gmra.mxu3 %vm157_vm8, %v1996_v15 }
 0x2a8   :  { %v173_v31 = vpop.f32.mrf.mxu1 }
 0x2a9   :  { %v174_v48 = vadd.f32 %v173_v31, %v2015_v24 }
 0x2ab   :  { %v254_v49 = vsel %vm253_vm9, %v174_v48, -inf }
 0x2b0   :  { %v175_v36 = vpop.f32.mrf.mxu1 }
 0x2b1   :  { %v2029_v37 = vadd.f32 %v175_v36, %v2022_v28 }
 0x2b3   :  { %v257_v38 = vsel %vm253_vm9, %v2029_v37, -inf }
 0x2ed   :  { %v198_v25 = vpop.f32.mrf.mxu2 }
 0x2ee   :  { %v199_v26 = vadd.f32 %v198_v25, %v2015_v24 }
 0x2f0   :  { %v260_v27 = vsel %vm253_vm9, %v199_v26, -inf }
 0x2f1   :  { %261 = vmax.xlane.f32.xlu0 %v260_v27 }
 0x2f5   :  { %v200_v29 = vpop.f32.mrf.mxu2 }
 0x2f6   :  { %v201_v30 = vadd.f32 %v200_v29, %v2022_v28 }
 0x2f7   :  { %v248_v33 = vpop.f32.mrf.mxu0 }
 0x2f8   :  { %v263_v32 = vsel %vm253_vm9, %v201_v30, -inf  ;;  %v249_v34 = vadd.f32 %v248_v33, %v2015_v24 }
 0x2f9   :  { %264 = vmax.xlane.f32.xlu2 %v263_v32 }
 0x2fa   :  { %v272_v35 = vsel %vm253_vm9, %v249_v34, -inf }
 0x2ff   :  { %v250_v42 = vpop.f32.mrf.mxu0 }
 0x300   :  { %v251_v43 = vadd.f32 %v250_v42, %v2022_v28 }
 0x301   :  { %273 = vmax.xlane.f32.xlu2 %v272_v35 }
 0x302   :  { %v275_v47 = vsel %vm253_vm9, %v251_v43, -inf }
 0x309   :  { %258 = vmax.xlane.f32.xlu2 %v257_v38 }
 0x31d   :  { %v223_v39 = vpop.f32.mrf.mxu3 }
 0x31e   :  { %v224_v40 = vadd.f32 %v223_v39, %v2015_v24 }
 0x320   :  { %v266_v41 = vsel %vm253_vm9, %v224_v40, -inf }
 0x321   :  { %267 = vmax.xlane.f32.xlu1 %v266_v41 }
 0x325   :  { %v225_v44 = vpop.f32.mrf.mxu3 }
 0x326   :  { %v226_v45 = vadd.f32 %v225_v44, %v2022_v28 }
 0x328   :  { %v269_v46 = vsel %vm253_vm9, %v226_v45, -inf }
 0x329   :  { %270 = vmax.xlane.f32.xlu0 %v269_v46  ;;  %276 = vmax.xlane.f32.xlu1 %v275_v47 }
 0x331   :  { %255 = vmax.xlane.f32.xlu0 %v254_v49 }
 0x364   :  { %v262_v52 = vpop.xlane.xlu0 %261 }
 0x365   :  { %v280_v54 = vsub.f32 %v199_v26, %v262_v52 }
 0x367   :  { %v290_v55 = vmul.f32 1.442695, %v280_v54 }
 0x369   :  { %1758 = vpow2.f32 %v290_v55 }
 0x36c   :  { %v265_v56 = vpop.xlane.xlu2 %264 }
 0x36d   :  { %v281_v61 = vsub.f32 %v201_v30, %v265_v56 }
 0x36f   :  { %v2041_v57 = vpop.eup %1758  ;;  %v292_v0 = vmul.f32 1.442695, %v281_v61 }
 0x370   :  { %v308_v58 = vsel %vm253_vm9, %v2041_v57, 0.0 }
 0x371   :  { %309 = vadd.xlane.f32.xlu1 %v308_v58 }
 0x374   :  { %v274_v59 = vpop.xlane.xlu2 %273 }
 0x375   :  { %v284_v60 = vsub.f32 %v249_v34, %v274_v59 }
 0x377   :  { %v298_v62 = vmul.f32 1.442695, %v284_v60 }
 0x379   :  { %1760 = vpow2.f32 %v298_v62 }
 0x37a   :  { %1762 = vpow2.f32 %v292_v0 }
 0x37c   :  { %v259_v30 = vpop.xlane.xlu2 %258 }
 0x37d   :  { %v279_v31 = vsub.f32 %v2029_v37, %v259_v30 }
 0x37f   :  { %v1761_v1 = vpop.eup %1760  ;;  %v288_v32 = vmul.f32 1.442695, %v279_v31 }
 0x380   :  { %v320_v2 = vsel %vm253_vm9, %v1761_v1, 0.0  ;;  %v2046_v3 = vpop.eup %1762 }
 0x381   :  { %321 = vadd.xlane.f32.xlu0 %v320_v2  ;;  %v311_v5 = vsel %vm253_vm9, %v2046_v3, 0.0 }
 0x389   :  { %312 = vadd.xlane.f32.xlu0 %v311_v5 }
 0x394   :  { %v268_v6 = vpop.xlane.xlu1 %267 }
 0x395   :  { %v282_v7 = vsub.f32 %v224_v40, %v268_v6 }
 0x397   :  { %v294_v8 = vmul.f32 1.442695, %v282_v7 }
 0x399   :  { %1764 = vpow2.f32 %v294_v8 }
 0x39c   :  { %v271_v11 = vpop.xlane.xlu0 %270  ;;  %v277_v12 = vpop.xlane.xlu1 %276 }
 0x39d   :  { %v283_v13 = vsub.f32 %v226_v45, %v271_v11  ;;  %v285_v14 = vsub.f32 %v251_v43, %v277_v12  ;;  %405 = vrot.lane.b32.xlu0 %v1996_v15, %s1880_s1 }
 0x39f   :  { %v1765_v16 = vpop.eup %1764  ;;  %v296_v17 = vmul.f32 1.442695, %v283_v13  ;;  %v300_v18 = vmul.f32 1.442695, %v285_v14 }
 0x3a0   :  { %v314_v19 = vsel %vm253_vm9, %v1765_v16, 0.0 }
 0x3a1   :  { %1766 = vpow2.f32 %v296_v17  ;;  %315 = vadd.xlane.f32.xlu2 %v314_v19 }
 0x3a2   :  { %1768 = vpow2.f32 %v300_v18 }
 0x3a4   :  { %v256_v25 = vpop.xlane.xlu0 %255 }
 0x3a5   :  { %v278_v26 = vsub.f32 %v174_v48, %v256_v25 }
 0x3a7   :  { %v1767_v20 = vpop.eup %1766  ;;  %v286_v27 = vmul.f32 1.442695, %v278_v26 }
 0x3a8   :  { %v1769_v21 = vpop.eup %1768  ;;  %v317_v22 = vsel %vm253_vm9, %v1767_v20, 0.0 }
 0x3a9   :  { %318 = vadd.xlane.f32.xlu1 %v317_v22  ;;  %v323_v23 = vsel %vm253_vm9, %v1769_v21, 0.0  ;;  %1770 = vpow2.f32 %v286_v27 }
 0x3aa   :  { %324 = vadd.xlane.f32.xlu2 %v323_v23  ;;  %1772 = vpow2.f32 %v288_v32 }
 0x3af   :  { %v2059_v15 = vpop.eup %1770 }
 0x3b0   :  { %v302_v29 = vsel %vm253_vm9, %v2059_v15, 0.0  ;;  %v1773_v33 = vpop.eup %1772 }
 0x3c2   :  { %430 = vrot.lane.b32.xlu2 %v1992_v9, %s1880_s1  ;;  %380 = vrot.lane.b32.xlu1 %v1988_v4, %s1880_s1  ;;  %v305_v9 = vsel %vm253_vm9, %v1773_v33, 0.0 }
 0x3c7   :  { %303 = vadd.xlane.f32.xlu0 %v302_v29 }
 0x3ca   :  { %355 = vrot.lane.b32.xlu2 %v1982_v63, %s1880_s1 }
 0x3e4   :  { %v310_v36 = vpop.xlane.xlu1 %309 }
 0x3ec   :  { %306 = vadd.xlane.f32.xlu1 %v305_v9  ;;  %v1683_v9 = vld [vmem:[%s2342_s3 + $0x8] sm:$0xff] }
 0x3f4   :  { %v322_v34 = vpop.xlane.xlu0 %321 }
 0x3fc   :  { %v313_v4 = vpop.xlane.xlu0 %312 }
 0x40f   :  { %v406_v35 = vpop.permute.xlu0 %405 }
 0x410   :  { %418 = vmatpush.bf16.msra.mxu3 %v406_v35 }
 0x414   :  { %v316_v38 = vpop.xlane.xlu2 %315 }
 0x415   :  { %1774 = vrcp.f32 %v316_v38 }
 0x416   :  { %1776 = vrcp.f32 %v322_v34  ;;  %v1682_v34 = vld [vmem:[%s2342_s3] sm:$0xff] }
 0x41b   :  { %v1775_v40 = vpop.eup %1774 }
 0x41c   :  { %v319_v39 = vpop.xlane.xlu1 %318  ;;  %v1777_v41 = vpop.eup %1776  ;;  %v338_v37 = vmul.f32 %v1775_v40, %v1765_v16 }
 0x41d   :  { %v325_v63 = vpop.xlane.xlu2 %324  ;;  %1778 = vrcp.f32 %v319_v39  ;;  %v340_v42 = vmul.f32 %v1777_v41, %v1761_v1 }
 0x41e   :  { %1780 = vrcp.f32 %v325_v63  ;;  %v346_v45 = vpack.c.bf16 %v338_v37, %v338_v37 }
 0x41f   :  { %1782 = vrcp.f32 %v313_v4  ;;  %v348_v47 = vpack.c.bf16 %v340_v42, %v340_v42 }
 0x420   :  { %1784 = vrcp.f32 %v310_v36  ;;  %v402_v56 = vunpack.c.l.b16 %v346_v45 }
 0x421   :  { %v427_v60 = vunpack.c.l.b16 %v348_v47 }
 0x423   :  { %v1779_v43 = vpop.eup %1778 }
 0x424   :  { %v1781_v44 = vpop.eup %1780  ;;  %v339_v46 = vmul.f32 %v1779_v43, %v1767_v20 }
 0x425   :  { %v341_v48 = vmul.f32 %v1781_v44, %v1769_v21  ;;  %v431_v49 = vpop.permute.xlu2 %430  ;;  %v1783_v54 = vpop.eup %1782 }
 0x426   :  { %v347_v52 = vpack.c.bf16 %v339_v46, %v339_v46  ;;  %443 = vmatpush.bf16.msrb.mxu0 %v431_v49  ;;  %v1785_v59 = vpop.eup %1784  ;;  %v337_v62 = vmul.f32 %v1783_v54, %v2046_v3  ;;  %v486_v54 = vperm.slane %v1975_v53, 1 }
 0x427   :  { %v349_v55 = vpack.c.bf16 %v341_v48, %v341_v48  ;;  %v336_v2 = vmul.f32 %v1785_v59, %v2041_v57 }
 0x428   :  { %v403_v58 = vunpack.c.l.b16 %v347_v52  ;;  %v345_v6 = vpack.c.bf16 %v337_v62, %v337_v62 }
 0x429   :  { %v428_v61 = vunpack.c.l.b16 %v349_v55  ;;  %v344_v7 = vpack.c.bf16 %v336_v2, %v336_v2 }
 0x42a   :  { %v404_v0 = vpack.c.b16 %v403_v58, %v402_v56  ;;  %v378_v8 = vunpack.c.l.b16 %v345_v6 }
 0x42b   :  { %v429_v1 = vpack.c.b16 %v428_v61, %v427_v60  ;;  %v377_v11 = vunpack.c.l.b16 %v344_v7 }
 0x42c   :  { %1514 = vmatmul.msk.bf16.vlgmr.msra.gmra.mxu3 %vm253_vm9, %v404_v0 }
 0x42d   :  { %1515 = vmatmul.msk.bf16.vlgmr.msrb.gmra.mxu0 %vm253_vm9, %v429_v1  ;;  %v356_v5 = vpop.permute.xlu2 %355  ;;  %v379_v13 = vpack.c.b16 %v378_v8, %v377_v11 }
 0x42e   :  { %368 = vmatpush.bf16.msrb.mxu1 %v356_v5 }
 0x432   :  { %508 = vmatpush.bf16.msra.mxu1 %v1683_v9 }
 0x434   :  { %v381_v12 = vpop.permute.xlu1 %380 }
 0x435   :  { %393 = vmatpush.bf16.msrb.mxu2 %v381_v12 }
 0x436   :  { %509 = vmatpush.bf16.msra.mxu1 %v1682_v34 }
 0x438   :  { %1513 = vmatmul.msk.bf16.vlgmr.msrb.gmra.mxu2 %vm253_vm9, %v379_v13 }
 0x43a   :  { %v304_v3 = vpop.xlane.xlu0 %303 }
 0x43b   :  { %1786 = vrcp.f32 %v304_v3 }
 0x441   :  { %v1787_v16 = vpop.eup %1786 }
 0x442   :  { %v334_v57 = vmul.f32 %v1787_v16, %v2059_v15 }
 0x444   :  { %v342_v18 = vpack.c.bf16 %v334_v57, %v334_v57  ;;  %v1684_v57 = vld [vmem:[%s2343_s4] sm:$0xff] }
 0x446   :  { %v352_v21 = vunpack.c.l.b16 %v342_v18 }
 0x45f   :  { %v307_v14 = vpop.xlane.xlu1 %306 }
 0x460   :  { %1788 = vrcp.f32 %v307_v14 }
 0x466   :  { %v1789_v17 = vpop.eup %1788 }
 0x467   :  { %v335_v19 = vmul.f32 %v1789_v17, %v1773_v33 }
 0x469   :  { %v343_v20 = vpack.c.bf16 %v335_v19, %v335_v19 }
 0x46b   :  { %v353_v22 = vunpack.c.l.b16 %v343_v20 }
 0x46d   :  { %v354_v23 = vpack.c.b16 %v353_v22, %v352_v21 }
 0x46f   :  { %1512 = vmatmul.msk.bf16.vlgmr.msrb.gmra.mxu1 %vm253_vm9, %v354_v23 }
 0x4aa   :  { %v445_v30 = vpop.f32.mrf.mxu0 }
 0x4af   :  { %v420_v26 = vpop.f32.mrf.mxu3 }
 0x4b2   :  { %v447_v15 = vpop.f32.mrf.mxu0 }
 0x4b3   :  { %v1732_v33 = vpack.i.bf16 %v447_v15, %v445_v30 }
 0x4b7   :  { %v422_v31 = vpop.f32.mrf.mxu3 }
 0x4b8   :  { %v1727_v32 = vpack.i.bf16 %v422_v31, %v420_v26 }
 0x4bb   :  { %v395_v25 = vpop.f32.mrf.mxu2 }
 0x4c3   :  { %v397_v27 = vpop.f32.mrf.mxu2 }
 0x4c4   :  { %v1722_v29 = vpack.i.bf16 %v397_v27, %v395_v25 }
 0x4c6   :  { %1723 = vrot.lane.b32.xlu2 %v1722_v29, %s1881_s12 }
 0x4ce   :  { %1728 = vrot.lane.b32.xlu2 %v1727_v32, %s1882_s13 }
 0x4d6   :  { %1733 = vrot.lane.b32.xlu2 %v1732_v33, %s1883_s14  ;;  %v562_v33 = vperm.slane %v1975_v53, 2 }
 0x4ec   :  { %v370_v35 = vpop.f32.mrf.mxu1 }
 0x4f4   :  { %v372_v41 = vpop.f32.mrf.mxu1 }
 0x520   :  { %v1724_v4 = vpop.permute.xlu2 %1723 }
 0x521   :  { %v1726_v38 = vunpack.i.h.bf16 %v1724_v4  ;;  %v1725_v39 = vunpack.i.l.bf16 %v1724_v4 }
 0x523   :  { %v474_v42 = vsel %vm157_vm8, %v370_v35, %v1725_v39  ;;  %v475_v43 = vsel %vm157_vm8, %v372_v41, %v1726_v38  ;;  %v565_v35 = vperm.slane %v1975_v53, 3 }
 0x528   :  { %v1729_v36 = vpop.permute.xlu2 %1728 }
 0x529   :  { %v1731_v40 = vunpack.i.h.bf16 %v1729_v36  ;;  %v1730_v63 = vunpack.i.l.bf16 %v1729_v36 }
 0x52b   :  { %v476_v46 = vsel %vm253_vm9, %v474_v42, %v1730_v63  ;;  %v477_v47 = vsel %vm253_vm9, %v475_v43, %v1731_v40  ;;  %v1692_v42 = vld [vmem:[%s2344_s5 + $0x30] sm:$0xff]  ;;  %v1691_v43 = vld [vmem:[%s2344_s5 + $0x28] sm:$0xff] }
 0x530   :  { %v1734_v37 = vpop.permute.xlu2 %1733 }
 0x531   :  { %v1736_v44 = vunpack.i.h.bf16 %v1734_v37  ;;  %v1735_v45 = vunpack.i.l.bf16 %v1734_v37  ;;  %v1693_v37 = vld [vmem:[%s2344_s5 + $0x38] sm:$0xff] }
 0x532   :  { %687 = vmatpush.bf16.msrb.mxu3 %v1693_v37 }
 0x533   :  { %v479_v48 = vsel %vm478_vm10, %v476_v46, %v1735_v45  ;;  %v480_v49 = vsel %vm478_vm10, %v477_v47, %v1736_v44  ;;  %v1690_v44 = vld [vmem:[%s2344_s5 + $0x20] sm:$0xff]  ;;  %v1689_v45 = vld [vmem:[%s2344_s5 + $0x18] sm:$0xff]  ;;  %v1688_v46 = vld [vmem:[%s2344_s5 + $0x10] sm:$0xff] }
 0x534   :  { %v481_v52 = vpack.c.bf16 %v480_v49, %v479_v48  ;;  %v1687_v47 = vld [vmem:[%s2344_s5 + $0x8] sm:$0xff]  ;;  %v1686_v48 = vld [vmem:[%s2344_s5] sm:$0xff]  ;;  %v573_v49 = vperm.slane %v1975_v53, 4 }
 0x536   :  { %1524 = vmatmul.msk.bf16.vlgmr.msra.gmra.mxu1 %vm42_vm0, %v481_v52  ;;  %688 = vmatpush.bf16.msrb.mxu3 %v1692_v42 }
 0x53a   :  { %689 = vmatpush.bf16.msrb.mxu3 %v1691_v43 }
 0x53e   :  { %690 = vmatpush.bf16.msrb.mxu3 %v1690_v44 }
 0x542   :  { %691 = vmatpush.bf16.msrb.mxu3 %v1689_v45 }
 0x546   :  { %692 = vmatpush.bf16.msrb.mxu3 %v1688_v46 }
 0x54a   :  { %693 = vmatpush.bf16.msrb.mxu3 %v1687_v47 }
 0x54e   :  { %694 = vmatpush.bf16.msrb.mxu3 %v1686_v48 }
 0x5b3   :  { %v511_v55 = vpop.f32.mrf.mxu1 }
 0x5b4   :  { %v512_v56 = vadd.f32 %v511_v55, %v486_v54 }
 0x5b6   :  { %v516_v58 = vadd.f32 %v512_v56, %v1965_v50 }
 0x5b8   :  { %v518_v59 = vsel %vm42_vm0, %v516_v58, 0.0 }
 0x5b9   :  { %519 = vadd.xlane.f32.xlu2 %v518_v59 }
 0x5bb   :  { %v513_v60 = vpop.f32.mrf.mxu1 }
 0x5bc   :  { %v514_v61 = vadd.f32 %v513_v60, %v486_v54 }
 0x5be   :  { %v517_v62 = vadd.f32 %v514_v61, %v1967_v51  ;;  %v1685_v51 = vld [vmem:[%s2343_s4 + $0x8] sm:$0xff] }
 0x5bf   :  { %595 = vmatpush.bf16.msra.mxu2 %v1685_v51 }
 0x5c0   :  { %v521_v0 = vsel %vm42_vm0, %v517_v62, 0.0 }
 0x5c1   :  { %522 = vadd.xlane.f32.xlu0 %v521_v0 }
 0x5c3   :  { %596 = vmatpush.bf16.msra.mxu2 %v1684_v57 }
 0x62c   :  { %v520_v1 = vpop.xlane.xlu2 %519 }
 0x62d   :  { %v524_v2 = vmul.f32 %v520_v1, %v1948_v10 }
 0x62f   :  { %v526_v5 = vsub.f32 %v516_v58, %v524_v2 }
 0x631   :  { %v528_v6 = vmul.f32 %v526_v5, %v526_v5 }
 0x633   :  { %v530_v7 = vsel %vm42_vm0, %v528_v6, 0.0 }
 0x634   :  { %v523_v8 = vpop.xlane.xlu0 %522  ;;  %531 = vadd.xlane.f32.xlu1 %v530_v7 }
 0x635   :  { %v525_v50 = vmul.f32 %v523_v8, %v1948_v10 }
 0x637   :  { %v527_v11 = vsub.f32 %v517_v62, %v525_v50 }
 0x639   :  { %v529_v12 = vmul.f32 %v527_v11, %v527_v11 }
 0x63b   :  { %v533_v13 = vsel %vm42_vm0, %v529_v12, 0.0 }
 0x63c   :  { %534 = vadd.xlane.f32.xlu0 %v533_v13 }
 0x6a7   :  { %v532_v3 = vpop.xlane.xlu1 %531 }
 0x6a8   :  { %v536_v14 = vmul.f32 %v532_v3, %v1948_v10 }
 0x6aa   :  { %v538_v16 = vadd.f32 1e-05, %v536_v14 }
 0x6ac   :  { %1790 = vrsqrt.f32 %v538_v16  ;;  %vm546_vm12 = vweird.f32 %v538_v16 }
 0x6af   :  { %v535_v17 = vpop.xlane.xlu0 %534 }
 0x6b0   :  { %v537_v18 = vmul.f32 %v535_v17, %v1948_v10 }
 0x6b2   :  { %v1791_v19 = vpop.eup %1790  ;;  %v539_v20 = vadd.f32 1e-05, %v537_v18 }
 0x6b3   :  { %v541_v21 = vmul.f32 %v1791_v19, %v538_v16  ;;  %vm547_vm11 = vweird.f32 %v1791_v19  ;;  %v638_v16 = vperm.slane %v1975_v53, 5 }
 0x6b4   :  { %1792 = vrsqrt.f32 %v539_v20  ;;  %vm548_vm13 = vmor %vm546_vm12, %vm547_vm11  ;;  %vm556_vm15 = vweird.f32 %v539_v20 }
 0x6b5   :  { %v542_v22 = vmul.f32 %v1791_v19, %v541_v21 }
 0x6b7   :  { %v543_v23 = vmul.f32 0.5, %v542_v22 }
 0x6b9   :  { %v544_v25 = vsub.f32 1.5, %v543_v23 }
 0x6ba   :  { %v1793_v26 = vpop.eup %1792 }
 0x6bb   :  { %v545_v27 = vmul.f32 %v1791_v19, %v544_v25  ;;  %v551_v29 = vmul.f32 %v1793_v26, %v539_v20  ;;  %vm557_vm14 = vweird.f32 %v1793_v26 }
 0x6bc   :  { %vm558_vm1 = vmor %vm556_vm15, %vm557_vm14 }
 0x6bd   :  { %v552_v30 = vmul.f32 %v1793_v26, %v551_v29  ;;  %v549_v31 = vsel %vm548_vm13, %v1791_v19, %v545_v27 }
 0x6be   :  { %v560_v9 = vmul.f32 %v549_v31, %v526_v5 }
 0x6bf   :  { %v553_v32 = vmul.f32 0.5, %v552_v30 }
 0x6c0   :  { %v563_v36 = vmul.f32 %v562_v33, %v560_v9 }
 0x6c1   :  { %v554_v15 = vsub.f32 1.5, %v553_v32 }
 0x6c2   :  { %v566_v40 = vadd.f32 %v565_v35, %v563_v36 }
 0x6c3   :  { %v555_v34 = vmul.f32 %v1793_v26, %v554_v15 }
 0x6c5   :  { %v559_v4 = vsel %vm558_vm1, %v1793_v26, %v555_v34  ;;  %v1695_v34 = vld [vmem:[%s2341_s2 + $0x18] sm:$0xff] }
 0x6c6   :  { %v561_v38 = vmul.f32 %v559_v4, %v527_v11  ;;  %783 = vmatpush.bf16.msra.mxu0 %v1695_v34 }
 0x6c8   :  { %v564_v39 = vmul.f32 %v562_v33, %v561_v38  ;;  %v1694_v38 = vld [vmem:[%s2341_s2 + $0x10] sm:$0xff] }
 0x6ca   :  { %v567_v63 = vadd.f32 %v565_v35, %v564_v39  ;;  %784 = vmatpush.bf16.msra.mxu0 %v1694_v38 }
 0x6cc   :  { %v568_v41 = vpack.c.bf16 %v567_v63, %v566_v40 }
 0x6ce   :  { %1533 = vmatmul.msk.bf16.vlgmr.msra.gmra.mxu2 %vm42_vm0, %v568_v41 }
 0x751   :  { %v598_v52 = vpop.f32.mrf.mxu2 }
 0x752   :  { %v599_v54 = vadd.f32 %v598_v52, %v573_v49 }
 0x754   :  { %v605_v55 = vmul.f32 0.044715, %v599_v54  ;;  %v603_v11 = vmul.f32 0.5, %v599_v54 }
 0x756   :  { %v607_v56 = vmul.f32 %v605_v55, %v599_v54  ;;  %v747_v55 = vperm.slane %v1975_v53, 6 }
 0x758   :  { %v609_v58 = vmul.f32 %v607_v56, %v599_v54 }
 0x759   :  { %v600_v59 = vpop.f32.mrf.mxu2 }
 0x75a   :  { %v611_v60 = vadd.f32 %v609_v58, %v599_v54  ;;  %v601_v61 = vadd.f32 %v600_v59, %v573_v49 }
 0x75c   :  { %v606_v62 = vmul.f32 0.044715, %v601_v61  ;;  %v613_v0 = vmul.f32 0.7978846, %v611_v60  ;;  %v604_v12 = vmul.f32 0.5, %v601_v61  ;;  %v750_v60 = vperm.slane %v1975_v53, 7 }
 0x75e   :  { %v608_v1 = vmul.f32 %v606_v62, %v601_v61  ;;  %1794 = vtanh.f32 %v613_v0 }
 0x760   :  { %v610_v2 = vmul.f32 %v608_v1, %v601_v61 }
 0x762   :  { %v612_v5 = vadd.f32 %v610_v2, %v601_v61 }
 0x764   :  { %v614_v6 = vmul.f32 0.7978846, %v612_v5  ;;  %v1795_v7 = vpop.eup %1794 }
 0x765   :  { %v617_v8 = vadd.f32 1.0, %v1795_v7 }
 0x766   :  { %1796 = vtanh.f32 %v614_v6  ;;  %v2162_v6 = vld [vmem:[%s2345_s6 + $0x8] sm:$0xff] }
 0x767   :  { %v619_v51 = vmul.f32 %v617_v8, %v603_v11  ;;  %v761_v7 = vperm.slane %v2162_v6, 0 }
 0x76c   :  { %v1797_v50 = vpop.eup %1796 }
 0x76d   :  { %v618_v13 = vadd.f32 1.0, %v1797_v50 }
 0x76f   :  { %v620_v3 = vmul.f32 %v618_v13, %v604_v12 }
 0x771   :  { %v621_v14 = vpack.c.bf16 %v620_v3, %v619_v51 }
 0x773   :  { %695 = vmatmul.bf16.vlgmr.msrb.gmra.mxu3 %v621_v14 }
 0x7f6   :  { %v696_v57 = vpop.f32.mrf.mxu3 }
 0x7f7   :  { %v697_v17 = vadd.f32 %v696_v57, %v638_v16 }
 0x7f9   :  { %v701_v18 = vadd.f32 %v697_v17, %v566_v40 }
 0x7fb   :  { %v703_v19 = vsel %vm42_vm0, %v701_v18, 0.0 }
 0x7fc   :  { %704 = vadd.xlane.f32.xlu1 %v703_v19 }
 0x7fe   :  { %v698_v20 = vpop.f32.mrf.mxu3 }
 0x7ff   :  { %v699_v21 = vadd.f32 %v698_v20, %v638_v16 }
 0x801   :  { %v702_v22 = vadd.f32 %v699_v21, %v567_v63 }
 0x803   :  { %v706_v23 = vsel %vm42_vm0, %v702_v22, 0.0 }
 0x804   :  { %707 = vadd.xlane.f32.xlu0 %v706_v23 }
 0x86f   :  { %v705_v25 = vpop.xlane.xlu1 %704 }
 0x870   :  { %v709_v26 = vmul.f32 %v705_v25, %v1948_v10 }
 0x872   :  { %v711_v27 = vsub.f32 %v701_v18, %v709_v26 }
 0x874   :  { %v713_v29 = vmul.f32 %v711_v27, %v711_v27 }
 0x876   :  { %v715_v30 = vsel %vm42_vm0, %v713_v29, 0.0 }
 0x877   :  { %v708_v31 = vpop.xlane.xlu0 %707  ;;  %716 = vadd.xlane.f32.xlu1 %v715_v30 }
 0x878   :  { %v710_v32 = vmul.f32 %v708_v31, %v1948_v10 }
 0x87a   :  { %v712_v15 = vsub.f32 %v702_v22, %v710_v32 }
 0x87c   :  { %v714_v33 = vmul.f32 %v712_v15, %v712_v15 }
 0x87e   :  { %v718_v9 = vsel %vm42_vm0, %v714_v33, 0.0 }
 0x87f   :  { %719 = vadd.xlane.f32.xlu0 %v718_v9 }
 0x8ea   :  { %v717_v4 = vpop.xlane.xlu1 %716 }
 0x8eb   :  { %v721_v35 = vmul.f32 %v717_v4, %v1948_v10 }
 0x8ed   :  { %v723_v36 = vadd.f32 1e-05, %v721_v35 }
 0x8ef   :  { %1798 = vrsqrt.f32 %v723_v36  ;;  %vm731_vm3 = vweird.f32 %v723_v36 }
 0x8f2   :  { %v720_v39 = vpop.xlane.xlu0 %719 }
 0x8f3   :  { %v722_v40 = vmul.f32 %v720_v39, %v1948_v10 }
 0x8f5   :  { %v1799_v63 = vpop.eup %1798  ;;  %v724_v41 = vadd.f32 1e-05, %v722_v40 }
 0x8f6   :  { %v726_v37 = vmul.f32 %v1799_v63, %v723_v36  ;;  %vm732_vm2 = vweird.f32 %v1799_v63 }
 0x8f7   :  { %1800 = vrsqrt.f32 %v724_v41  ;;  %vm733_vm4 = vmor %vm731_vm3, %vm732_vm2  ;;  %vm741_vm6 = vweird.f32 %v724_v41 }
 0x8f8   :  { %v727_v42 = vmul.f32 %v1799_v63, %v726_v37 }
 0x8fa   :  { %v728_v43 = vmul.f32 0.5, %v727_v42 }
 0x8fc   :  { %v729_v44 = vsub.f32 1.5, %v728_v43 }
 0x8fd   :  { %v1801_v45 = vpop.eup %1800 }
 0x8fe   :  { %v730_v46 = vmul.f32 %v1799_v63, %v729_v44  ;;  %v736_v47 = vmul.f32 %v1801_v45, %v724_v41  ;;  %vm742_vm5 = vweird.f32 %v1801_v45 }
 0x8ff   :  { %vm743_vm7 = vmor %vm741_vm6, %vm742_vm5  ;;  %vm1411_vm5 = vcmask 1040384  }
 0x900   :  { %v737_v48 = vmul.f32 %v1801_v45, %v736_v47  ;;  %v734_v49 = vsel %vm733_vm4, %v1799_v63, %v730_v46 }
 0x901   :  { %v745_v56 = vmul.f32 %v734_v49, %v711_v27 }
 0x902   :  { %v738_v52 = vmul.f32 0.5, %v737_v48 }
 0x903   :  { %v748_v61 = vmul.f32 %v747_v55, %v745_v56 }
 0x904   :  { %v739_v54 = vsub.f32 1.5, %v738_v52 }
 0x905   :  { %v2152_v1 = vadd.f32 %v750_v60, %v748_v61 }
 0x906   :  { %v740_v58 = vmul.f32 %v1801_v45, %v739_v54 }
 0x908   :  { %v744_v59 = vsel %vm743_vm7, %v1801_v45, %v740_v58 }
 0x909   :  { %v746_v62 = vmul.f32 %v744_v59, %v712_v15 }
 0x90b   :  { %v749_v0 = vmul.f32 %v747_v55, %v746_v62 }
 0x90d   :  { %v2154_v2 = vadd.f32 %v750_v60, %v749_v0 }
 0x90f   :  { %v755_v5 = vpack.c.bf16 %v2154_v2, %v2152_v1 }
 0x911   :  { %1579 = vmatmul.msk.bf16.vlgmr.msra.gmra.mxu0 %vm42_vm0, %v755_v5 }
 0x98e   :  { %v786_v53 = vpop.f32.mrf.mxu0 }
 0x98f   :  { %v787_v8 = vadd.f32 %v786_v53, %v761_v7 }
 0x991   :  { %v791_v50 = vpack.c.bf16 %v787_v8, %v787_v8 }
 0x993   :  { %799 = vrot.lane.b32.xlu2 %v791_v50, %s1876_s24  ;;  %795 = vrot.lane.b32.xlu1 %v791_v50, %s1877_s25  ;;  %v807_v3 = vunpack.c.l.b16 %v791_v50 }
 0x996   :  { %v788_v11 = vpop.f32.mrf.mxu0 }
 0x997   :  { %v789_v12 = vadd.f32 %v788_v11, %v761_v7 }
 0x999   :  { %v792_v13 = vpack.c.bf16 %v789_v12, %v789_v12 }
 0x99b   :  { %797 = vrot.lane.b32.xlu0 %v792_v13, %s1877_s25  ;;  %801 = vrot.lane.b32.xlu1 %v792_v13, %s1876_s24  ;;  %v808_v51 = vunpack.c.l.b16 %v792_v13 }
 0x99d   :  { %v2171_v14 = vpack.c.b16 %v808_v51, %v807_v3 }
 0x9a3   :  { %803 = vrot.lane.b32.xlu0 %v791_v50, %s1878_s26  ;;  %805 = vrot.lane.b32.xlu1 %v792_v13, %s1878_s26 }
 0x9ab   :  { %810 = vrot.lane.b32.xlu0 %v2171_v14, %s1879_s27 }
 0x9ed   :  { %v800_v57 = vpop.permute.xlu2 %799 }
 0x9ee   :  { %v857_v19 = vunpack.c.l.b16 %v800_v57 }
 0xa05   :  { %v796_v16 = vpop.permute.xlu1 %795 }
 0xa06   :  { %v832_v20 = vunpack.c.l.b16 %v796_v16 }
 0xa0d   :  { %v798_v17 = vpop.permute.xlu0 %797  ;;  %v802_v18 = vpop.permute.xlu1 %801 }
 0xa0e   :  { %v833_v21 = vunpack.c.l.b16 %v798_v17  ;;  %v858_v22 = vunpack.c.l.b16 %v802_v18 }
 0xa10   :  { %v2175_v23 = vpack.c.b16 %v833_v21, %v832_v20  ;;  %v2177_v25 = vpack.c.b16 %v858_v22, %v857_v19 }
 0xa12   :  { %835 = vrot.lane.b32.xlu2 %v2175_v23, %s1879_s27  ;;  %860 = vrot.lane.b32.xlu1 %v2177_v25, %s1879_s27 }
 0xa15   :  { %v804_v26 = vpop.permute.xlu0 %803  ;;  %v806_v27 = vpop.permute.xlu1 %805 }
 0xa16   :  { %v882_v29 = vunpack.c.l.b16 %v804_v26  ;;  %v883_v30 = vunpack.c.l.b16 %v806_v27 }
 0xa18   :  { %v2183_v31 = vpack.c.b16 %v883_v30, %v882_v29 }
 0xa1a   :  { %885 = vrot.lane.b32.xlu0 %v2183_v31, %s1879_s27 }
 0xa1d   :  { %v811_v32 = vpop.permute.xlu0 %810 }
 0xa1e   :  { %v816_v15 = vsel %vm157_vm8, %v811_v32, 0 }
 0xa1f   :  { %825 = vmatpush.bf16.xpose.msrb.mxu1 %v816_v15 }
 0xa26   :  { %1580 = vmatmul.msk.bf16.vlgmr.msrb.gmra.mxu1 %vm157_vm8, %v2171_v14 }
 0xa6c   :  { %v836_v33 = vpop.permute.xlu2 %835 }
 0xa6d   :  { %v841_v9 = vsel %vm157_vm8, %v836_v33, 0 }
 0xa6e   :  { %850 = vmatpush.bf16.xpose.msrb.mxu2 %v841_v9 }
 0xa75   :  { %1581 = vmatmul.msk.bf16.vlgmr.msrb.gmra.mxu2 %vm157_vm8, %v2175_v23 }
 0xa84   :  { %v861_v34 = vpop.permute.xlu1 %860 }
 0xa85   :  { %v866_v4 = vsel %vm157_vm8, %v861_v34, 0 }
 0xa86   :  { %875 = vmatpush.bf16.xpose.msrb.mxu0 %v866_v4 }
 0xa8c   :  { %v886_v35 = vpop.permute.xlu0 %885 }
 0xa8d   :  { %v891_v36 = vsel %vm157_vm8, %v886_v35, 0  ;;  %1582 = vmatmul.msk.bf16.vlgmr.msrb.gmra.mxu0 %vm157_vm8, %v2177_v25 }
 0xa8e   :  { %900 = vmatpush.bf16.xpose.msra.mxu1 %v891_v36 }
 0xa95   :  { %1583 = vmatmul.msk.bf16.vlgmr.msra.gmra.mxu1 %vm157_vm8, %v2183_v31 }
 0xaa3   :  { %v827_v63 = vpop.f32.mrf.mxu1 }
 0xaa4   :  { %v828_v56 = vadd.f32 %v827_v63, %v2015_v24 }
 0xaa6   :  { %v907_v61 = vsel %vm253_vm9, %v828_v56, -inf }
 0xaab   :  { %v829_v43 = vpop.f32.mrf.mxu1 }
 0xaac   :  { %v830_v58 = vadd.f32 %v829_v43, %v2022_v28 }
 0xaae   :  { %v910_v0 = vsel %vm253_vm9, %v830_v58, -inf }
 0xaf8   :  { %v852_v38 = vpop.f32.mrf.mxu2 }
 0xaf9   :  { %v853_v39 = vadd.f32 %v852_v38, %v2015_v24 }
 0xafb   :  { %v913_v40 = vsel %vm253_vm9, %v853_v39, -inf }
 0xafc   :  { %914 = vmax.xlane.f32.xlu2 %v913_v40 }
 0xb00   :  { %v854_v41 = vpop.f32.mrf.mxu2 }
 0xb01   :  { %v855_v37 = vadd.f32 %v854_v41, %v2022_v28 }
 0xb03   :  { %v916_v42 = vsel %vm253_vm9, %v855_v37, -inf }
 0xb04   :  { %917 = vmax.xlane.f32.xlu1 %v916_v42 }
 0xb0a   :  { %v877_v44 = vpop.f32.mrf.mxu0 }
 0xb0b   :  { %v878_v45 = vadd.f32 %v877_v44, %v2015_v24 }
 0xb0d   :  { %v919_v46 = vsel %vm253_vm9, %v878_v45, -inf }
 0xb0e   :  { %920 = vmax.xlane.f32.xlu0 %v919_v46 }
 0xb12   :  { %v879_v47 = vpop.f32.mrf.mxu0  ;;  %v902_v48 = vpop.f32.mrf.mxu1 }
 0xb13   :  { %v880_v49 = vadd.f32 %v879_v47, %v2022_v28  ;;  %v903_v52 = vadd.f32 %v902_v48, %v2015_v24 }
 0xb15   :  { %v922_v54 = vsel %vm253_vm9, %v880_v49, -inf  ;;  %v925_v55 = vsel %vm253_vm9, %v903_v52, -inf }
 0xb16   :  { %923 = vmax.xlane.f32.xlu2 %v922_v54  ;;  %926 = vmax.xlane.f32.xlu1 %v925_v55 }
 0xb1a   :  { %v904_v59 = vpop.f32.mrf.mxu1 }
 0xb1b   :  { %v905_v60 = vadd.f32 %v904_v59, %v2022_v28 }
 0xb1d   :  { %v928_v62 = vsel %vm253_vm9, %v905_v60, -inf }
 0xb1e   :  { %908 = vmax.xlane.f32.xlu2 %v907_v61  ;;  %929 = vmax.xlane.f32.xlu0 %v928_v62 }
 0xb1f   :  { %911 = vmax.xlane.f32.xlu1 %v910_v0 }
 0xb6f   :  { %v915_v5 = vpop.xlane.xlu2 %914 }
 0xb70   :  { %v933_v7 = vsub.f32 %v853_v39, %v915_v5 }
 0xb72   :  { %v943_v53 = vmul.f32 1.442695, %v933_v7 }
 0xb74   :  { %1802 = vpow2.f32 %v943_v53 }
 0xb77   :  { %v918_v28 = vpop.xlane.xlu1 %917 }
 0xb78   :  { %v934_v19 = vsub.f32 %v855_v37, %v918_v28 }
 0xb7a   :  { %v2215_v8 = vpop.eup %1802  ;;  %v945_v21 = vmul.f32 1.442695, %v934_v19 }
 0xb7b   :  { %v961_v24 = vsel %vm253_vm9, %v2215_v8, 0.0 }
 0xb7c   :  { %962 = vadd.xlane.f32.xlu0 %v961_v24 }
 0xb81   :  { %v921_v50 = vpop.xlane.xlu0 %920 }
 0xb82   :  { %v935_v11 = vsub.f32 %v878_v45, %v921_v50 }
 0xb84   :  { %v947_v12 = vmul.f32 1.442695, %v935_v11 }
 0xb86   :  { %1804 = vpow2.f32 %v947_v12 }
 0xb89   :  { %v924_v13 = vpop.xlane.xlu2 %923  ;;  %v927_v51 = vpop.xlane.xlu1 %926 }
 0xb8a   :  { %v936_v3 = vsub.f32 %v880_v49, %v924_v13  ;;  %v937_v16 = vsub.f32 %v903_v52, %v927_v51 }
 0xb8c   :  { %v1805_v57 = vpop.eup %1804  ;;  %v949_v17 = vmul.f32 1.442695, %v936_v3  ;;  %v951_v18 = vmul.f32 1.442695, %v937_v16 }
 0xb8d   :  { %v967_v20 = vsel %vm253_vm9, %v1805_v57, 0.0 }
 0xb8e   :  { %1806 = vpow2.f32 %v949_v17  ;;  %968 = vadd.xlane.f32.xlu1 %v967_v20 }
 0xb8f   :  { %1808 = vpow2.f32 %v951_v18 }
 0xb90   :  { %1810 = vpow2.f32 %v945_v21 }
 0xb91   :  { %v930_v22 = vpop.xlane.xlu0 %929  ;;  %v909_v35 = vpop.xlane.xlu2 %908 }
 0xb92   :  { %v938_v26 = vsub.f32 %v905_v60, %v930_v22  ;;  %v931_v36 = vsub.f32 %v828_v56, %v909_v35  ;;  %v912_v39 = vpop.xlane.xlu1 %911 }
 0xb93   :  { %v932_v40 = vsub.f32 %v830_v58, %v912_v39 }
 0xb94   :  { %v1807_v27 = vpop.eup %1806  ;;  %v953_v29 = vmul.f32 1.442695, %v938_v26  ;;  %v939_v38 = vmul.f32 1.442695, %v931_v36 }
 0xb95   :  { %v2220_v30 = vpop.eup %1808  ;;  %v970_v32 = vsel %vm253_vm9, %v1807_v27, 0.0  ;;  %v941_v41 = vmul.f32 1.442695, %v932_v40 }
 0xb96   :  { %971 = vadd.xlane.f32.xlu0 %v970_v32  ;;  %v973_v15 = vsel %vm253_vm9, %v2220_v30, 0.0  ;;  %1812 = vpow2.f32 %v953_v29  ;;  %v1811_v33 = vpop.eup %1810 }
 0xb97   :  { %974 = vadd.xlane.f32.xlu2 %v973_v15  ;;  %v964_v34 = vsel %vm253_vm9, %v1811_v33, 0.0  ;;  %1814 = vpow2.f32 %v939_v38 }
 0xb98   :  { %1816 = vpow2.f32 %v941_v41 }
 0xb9c   :  { %v1813_v9 = vpop.eup %1812 }
 0xb9d   :  { %v976_v4 = vsel %vm253_vm9, %v1813_v9, 0.0  ;;  %v2235_v63 = vpop.eup %1814 }
 0xb9e   :  { %977 = vadd.xlane.f32.xlu1 %v976_v4 }
 0xb9f   :  { %965 = vadd.xlane.f32.xlu2 %v964_v34 }
 0xbaa   :  { %1033 = vrot.lane.b32.xlu0 %v2175_v23, %s1880_s1  ;;  %v955_v23 = vsel %vm253_vm9, %v2235_v63, 0.0 }
 0xbb7   :  { %1058 = vrot.lane.b32.xlu2 %v2177_v25, %s1880_s1  ;;  %1083 = vrot.lane.b32.xlu1 %v2183_v31, %s1880_s1  ;;  %v1817_v25 = vpop.eup %1816 }
 0xbb8   :  { %v958_v31 = vsel %vm253_vm9, %v1817_v25, 0.0 }
 0xbbf   :  { %1008 = vrot.lane.b32.xlu1 %v2171_v14, %s1880_s1  ;;  %s1884_s1 = smov [#allocation2]  }
 0xbd4   :  { %956 = vadd.xlane.f32.xlu0 %v955_v23  ;;  %v1697_v23 = vld [vmem:[%s2342_s3 + $0x18] sm:$0xff] }
 0xbe0   :  { %959 = vadd.xlane.f32.xlu2 %v958_v31 }
 0xbef   :  { %v963_v37 = vpop.xlane.xlu0 %962 }
 0xc01   :  { %v969_v42 = vpop.xlane.xlu1 %968 }
 0xc02   :  { %1818 = vrcp.f32 %v969_v42 }
 0xc08   :  { %v1819_v44 = vpop.eup %1818 }
 0xc09   :  { %v972_v14 = vpop.xlane.xlu0 %971  ;;  %v991_v47 = vmul.f32 %v1819_v44, %v1805_v57 }
 0xc0a   :  { %v975_v43 = vpop.xlane.xlu2 %974  ;;  %1820 = vrcp.f32 %v972_v14 }
 0xc0b   :  { %1822 = vrcp.f32 %v963_v37  ;;  %v999_v56 = vpack.c.bf16 %v991_v47, %v991_v47 }
 0xc0d   :  { %v1055_v61 = vunpack.c.l.b16 %v999_v56 }
 0xc10   :  { %v1821_v45 = vpop.eup %1820 }
 0xc11   :  { %v992_v46 = vmul.f32 %v1821_v45, %v1807_v27  ;;  %v1823_v49 = vpop.eup %1822  ;;  %v978_v54 = vpop.xlane.xlu1 %977 }
 0xc12   :  { %v966_v48 = vpop.xlane.xlu2 %965  ;;  %v989_v55 = vmul.f32 %v1823_v49, %v2215_v8 }
 0xc13   :  { %1824 = vrcp.f32 %v966_v48  ;;  %v1000_v52 = vpack.c.bf16 %v992_v46, %v992_v46 }
 0xc14   :  { %1826 = vrcp.f32 %v978_v54  ;;  %v997_v60 = vpack.c.bf16 %v989_v55, %v989_v55 }
 0xc15   :  { %v1056_v58 = vunpack.c.l.b16 %v1000_v52  ;;  %1828 = vrcp.f32 %v975_v43 }
 0xc16   :  { %v1030_v28 = vunpack.c.l.b16 %v997_v60 }
 0xc17   :  { %v1057_v5 = vpack.c.b16 %v1056_v58, %v1055_v61  ;;  %v1139_v61 = vperm.slane %v2162_v6, 1 }
 0xc19   :  { %v1825_v59 = vpop.eup %1824 }
 0xc1a   :  { %v990_v62 = vmul.f32 %v1825_v59, %v1811_v33  ;;  %v1059_v0 = vpop.permute.xlu2 %1058  ;;  %v1827_v24 = vpop.eup %1826 }
 0xc1b   :  { %1071 = vmatpush.bf16.msra.mxu0 %v1059_v0  ;;  %v1829_v8 = vpop.eup %1828  ;;  %v994_v12 = vmul.f32 %v1827_v24, %v1813_v9 }
 0xc1c   :  { %v998_v7 = vpack.c.bf16 %v990_v62, %v990_v62  ;;  %v1034_v53 = vpop.permute.xlu0 %1033  ;;  %v993_v13 = vmul.f32 %v1829_v8, %v2220_v30 }
 0xc1d   :  { %1046 = vmatpush.bf16.msra.mxu3 %v1034_v53  ;;  %v1002_v51 = vpack.c.bf16 %v994_v12, %v994_v12 }
 0xc1e   :  { %v1031_v50 = vunpack.c.l.b16 %v998_v7  ;;  %1586 = vmatmul.msk.bf16.vlgmr.msra.gmra.mxu0 %vm253_vm9, %v1057_v5  ;;  %v1001_v3 = vpack.c.bf16 %v993_v13, %v993_v13 }
 0xc1f   :  { %v1081_v16 = vunpack.c.l.b16 %v1002_v51 }
 0xc20   :  { %v1032_v11 = vpack.c.b16 %v1031_v50, %v1030_v28  ;;  %v1080_v57 = vunpack.c.l.b16 %v1001_v3 }
 0xc22   :  { %1585 = vmatmul.msk.bf16.vlgmr.msra.gmra.mxu3 %vm253_vm9, %v1032_v11  ;;  %v1082_v18 = vpack.c.b16 %v1081_v16, %v1080_v57 }
 0xc29   :  { %v1084_v17 = vpop.permute.xlu1 %1083 }
 0xc2a   :  { %1096 = vmatpush.bf16.msrb.mxu1 %v1084_v17 }
 0xc2d   :  { %1587 = vmatmul.msk.bf16.vlgmr.msrb.gmra.mxu1 %vm253_vm9, %v1082_v18 }
 0xc31   :  { %v1009_v19 = vpop.permute.xlu1 %1008 }
 0xc32   :  { %1021 = vmatpush.bf16.msra.mxu2 %v1009_v19 }
 0xc36   :  { %1161 = vmatpush.bf16.msrb.mxu2 %v1697_v23 }
 0xc47   :  { %v957_v20 = vpop.xlane.xlu0 %956 }
 0xc48   :  { %1830 = vrcp.f32 %v957_v20 }
 0xc4e   :  { %v1831_v22 = vpop.eup %1830 }
 0xc4f   :  { %v987_v26 = vmul.f32 %v1831_v22, %v2235_v63 }
 0xc51   :  { %v995_v29 = vpack.c.bf16 %v987_v26, %v987_v26 }
 0xc53   :  { %v960_v21 = vpop.xlane.xlu2 %959  ;;  %v1005_v15 = vunpack.c.l.b16 %v995_v29 }
 0xc54   :  { %1832 = vrcp.f32 %v960_v21  ;;  %v1698_v21 = vld [vmem:[%s2343_s4 + $0x10] sm:$0xff] }
 0xc5a   :  { %v1833_v27 = vpop.eup %1832 }
 0xc5b   :  { %v988_v30 = vmul.f32 %v1833_v27, %v1817_v25  ;;  %v1696_v25 = vld [vmem:[%s2342_s3 + $0x10] sm:$0xff] }
 0xc5c   :  { %1162 = vmatpush.bf16.msrb.mxu2 %v1696_v25  ;;  %v1218_v25 = vperm.slane %v2162_v6, 3 }
 0xc5d   :  { %v996_v32 = vpack.c.bf16 %v988_v30, %v988_v30 }
 0xc5f   :  { %v1006_v33 = vunpack.c.l.b16 %v996_v32 }
 0xc61   :  { %v1007_v9 = vpack.c.b16 %v1006_v33, %v1005_v15 }
 0xc63   :  { %1584 = vmatmul.msk.bf16.vlgmr.msra.gmra.mxu2 %vm253_vm9, %v1007_v9 }
 0xc9b   :  { %v1073_v34 = vpop.f32.mrf.mxu0 }
 0xca3   :  { %v1075_v4 = vpop.f32.mrf.mxu0 }
 0xca4   :  { %v1737_v35 = vpack.i.bf16 %v1075_v4, %v1073_v34 }
 0xca5   :  { %v1048_v36 = vpop.f32.mrf.mxu3 }
 0xca6   :  { %1738 = vrot.lane.b32.xlu1 %v1737_v35, %s1882_s13 }
 0xcaa   :  { %v1098_v38 = vpop.f32.mrf.mxu1 }
 0xcad   :  { %v1050_v39 = vpop.f32.mrf.mxu3 }
 0xcae   :  { %v1742_v40 = vpack.i.bf16 %v1050_v39, %v1048_v36 }
 0xcb0   :  { %1743 = vrot.lane.b32.xlu1 %v1742_v40, %s1881_s12  ;;  %v1215_v40 = vperm.slane %v2162_v6, 2  ;;  %s1488_s12 = sshll.u32 %s1884_s1, 4  ;;  %s1489_s12 = int_to_ptr.vmem [resolvable:$true] %s1488_s12 }
 0xcb2   :  { %v1100_v63 = vpop.f32.mrf.mxu1 }
 0xcb3   :  { %v1747_v41 = vpack.i.bf16 %v1100_v63, %v1098_v38 }
 0xcb8   :  { %1748 = vrot.lane.b32.xlu1 %v1747_v41, %s1883_s14 }
 0xce6   :  { %v1023_v37 = vpop.f32.mrf.mxu2 }
 0xcee   :  { %v1025_v44 = vpop.f32.mrf.mxu2 }
 0xd18   :  { %v1739_v31 = vpop.permute.xlu1 %1738 }
 0xd19   :  { %v1741_v47 = vunpack.i.h.bf16 %v1739_v31  ;;  %v1740_v48 = vunpack.i.l.bf16 %v1739_v31 }
 0xd22   :  { %v1744_v42 = vpop.permute.xlu1 %1743 }
 0xd23   :  { %v1746_v14 = vunpack.i.h.bf16 %v1744_v42  ;;  %v1745_v43 = vunpack.i.l.bf16 %v1744_v42 }
 0xd25   :  { %v1127_v45 = vsel %vm157_vm8, %v1023_v37, %v1745_v43  ;;  %v1128_v46 = vsel %vm157_vm8, %v1025_v44, %v1746_v14 }
 0xd26   :  { %v1129_v55 = vsel %vm253_vm9, %v1127_v45, %v1740_v48  ;;  %v1130_v56 = vsel %vm253_vm9, %v1128_v46, %v1741_v47  ;;  %v1707_v45 = vld [vmem:[%s2344_s5 + $0x78] sm:$0xff]  ;;  %v1706_v46 = vld [vmem:[%s2344_s5 + $0x70] sm:$0xff]  ;;  %v1705_v47 = vld [vmem:[%s2344_s5 + $0x68] sm:$0xff] }
 0xd27   :  { %1342 = vmatpush.bf16.msrb.mxu0 %v1707_v45  ;;  %v1704_v48 = vld [vmem:[%s2344_s5 + $0x60] sm:$0xff] }
 0xd2a   :  { %v1749_v49 = vpop.permute.xlu1 %1748 }
 0xd2b   :  { %v1751_v52 = vunpack.i.h.bf16 %v1749_v49  ;;  %v1750_v54 = vunpack.i.l.bf16 %v1749_v49  ;;  %1343 = vmatpush.bf16.msrb.mxu0 %v1706_v46  ;;  %v1703_v49 = vld [vmem:[%s2344_s5 + $0x58] sm:$0xff] }
 0xd2d   :  { %v1131_v58 = vsel %vm478_vm10, %v1129_v55, %v1750_v54  ;;  %v1132_v59 = vsel %vm478_vm10, %v1130_v56, %v1751_v52  ;;  %v1702_v52 = vld [vmem:[%s2344_s5 + $0x50] sm:$0xff]  ;;  %v1701_v54 = vld [vmem:[%s2344_s5 + $0x48] sm:$0xff]  ;;  %v1700_v55 = vld [vmem:[%s2344_s5 + $0x40] sm:$0xff]  ;;  %v1227_v56 = vperm.slane %v2162_v6, 4 }
 0xd2e   :  { %v1133_v60 = vpack.c.bf16 %v1132_v59, %v1131_v58 }
 0xd2f   :  { %1344 = vmatpush.bf16.msrb.mxu0 %v1705_v47 }
 0xd30   :  { %1600 = vmatmul.msk.bf16.vlgmr.msrb.gmra.mxu2 %vm42_vm0, %v1133_v60 }
 0xd33   :  { %1345 = vmatpush.bf16.msrb.mxu0 %v1704_v48 }
 0xd37   :  { %1346 = vmatpush.bf16.msrb.mxu0 %v1703_v49 }
 0xd3b   :  { %1347 = vmatpush.bf16.msrb.mxu0 %v1702_v52 }
 0xd3f   :  { %1348 = vmatpush.bf16.msrb.mxu0 %v1701_v54 }
 0xd43   :  { %1349 = vmatpush.bf16.msrb.mxu0 %v1700_v55 }
 0xdb3   :  { %v1164_v62 = vpop.f32.mrf.mxu2 }
 0xdb4   :  { %v1165_v0 = vadd.f32 %v1164_v62, %v1139_v61 }
 0xdb6   :  { %v1169_v5 = vadd.f32 %v1165_v0, %v2152_v1 }
 0xdb8   :  { %v1171_v7 = vsel %vm42_vm0, %v1169_v5, 0.0 }
 0xdb9   :  { %1172 = vadd.xlane.f32.xlu0 %v1171_v7 }
 0xdbb   :  { %v1166_v53 = vpop.f32.mrf.mxu2 }
 0xdbc   :  { %v1167_v24 = vadd.f32 %v1166_v53, %v1139_v61 }
 0xdbe   :  { %v1170_v28 = vadd.f32 %v1167_v24, %v2154_v2  ;;  %v1699_v2 = vld [vmem:[%s2343_s4 + $0x18] sm:$0xff] }
 0xdbf   :  { %1249 = vmatpush.bf16.msrb.mxu3 %v1699_v2 }
 0xdc0   :  { %v1174_v50 = vsel %vm42_vm0, %v1170_v28, 0.0 }
 0xdc1   :  { %1175 = vadd.xlane.f32.xlu1 %v1174_v50 }
 0xdc3   :  { %1250 = vmatpush.bf16.msrb.mxu3 %v1698_v21 }
 0xe2c   :  { %v1173_v8 = vpop.xlane.xlu0 %1172 }
 0xe2d   :  { %v1177_v11 = vmul.f32 %v1173_v8, %v1948_v10 }
 0xe2f   :  { %v1179_v12 = vsub.f32 %v1169_v5, %v1177_v11 }
 0xe31   :  { %v1181_v13 = vmul.f32 %v1179_v12, %v1179_v12 }
 0xe33   :  { %v1183_v51 = vsel %vm42_vm0, %v1181_v13, 0.0 }
 0xe34   :  { %v1176_v3 = vpop.xlane.xlu1 %1175  ;;  %1184 = vadd.xlane.f32.xlu2 %v1183_v51 }
 0xe35   :  { %v1178_v1 = vmul.f32 %v1176_v3, %v1948_v10 }
 0xe37   :  { %v1180_v16 = vsub.f32 %v1170_v28, %v1178_v1 }
 0xe39   :  { %v1182_v57 = vmul.f32 %v1180_v16, %v1180_v16 }
 0xe3b   :  { %v1186_v17 = vsel %vm42_vm0, %v1182_v57, 0.0 }
 0xe3c   :  { %1187 = vadd.xlane.f32.xlu0 %v1186_v17 }
 0xea7   :  { %v1185_v18 = vpop.xlane.xlu2 %1184 }
 0xea8   :  { %v1189_v19 = vmul.f32 %v1185_v18, %v1948_v10  ;;  %v1293_v18 = vperm.slane %v2162_v6, 5 }
 0xeaa   :  { %v1191_v20 = vadd.f32 1e-05, %v1189_v19 }
 0xeac   :  { %1834 = vrsqrt.f32 %v1191_v20  ;;  %vm1199_vm9 = vweird.f32 %v1191_v20 }
 0xeaf   :  { %v1188_v22 = vpop.xlane.xlu0 %1187 }
 0xeb0   :  { %v1190_v26 = vmul.f32 %v1188_v22, %v1948_v10 }
 0xeb2   :  { %v1835_v27 = vpop.eup %1834  ;;  %v1192_v29 = vadd.f32 1e-05, %v1190_v26 }
 0xeb3   :  { %v1194_v30 = vmul.f32 %v1835_v27, %v1191_v20  ;;  %vm1200_vm8 = vweird.f32 %v1835_v27 }
 0xeb4   :  { %1836 = vrsqrt.f32 %v1192_v29  ;;  %vm1201_vm10 = vmor %vm1199_vm9, %vm1200_vm8  ;;  %vm1209_vm12 = vweird.f32 %v1192_v29 }
 0xeb5   :  { %v1195_v32 = vmul.f32 %v1835_v27, %v1194_v30 }
 0xeb7   :  { %v1196_v15 = vmul.f32 0.5, %v1195_v32 }
 0xeb9   :  { %v1197_v33 = vsub.f32 1.5, %v1196_v15 }
 0xeba   :  { %v1837_v9 = vpop.eup %1836 }
 0xebb   :  { %v1198_v34 = vmul.f32 %v1835_v27, %v1197_v33  ;;  %v1204_v4 = vmul.f32 %v1837_v9, %v1192_v29  ;;  %vm1210_vm11 = vweird.f32 %v1837_v9 }
 0xebc   :  { %vm1211_vm13 = vmor %vm1209_vm12, %vm1210_vm11 }
 0xebd   :  { %v1205_v35 = vmul.f32 %v1837_v9, %v1204_v4  ;;  %v1202_v36 = vsel %vm1201_vm10, %v1835_v27, %v1198_v34 }
 0xebe   :  { %v1213_v63 = vmul.f32 %v1202_v36, %v1179_v12 }
 0xebf   :  { %v1206_v38 = vmul.f32 0.5, %v1205_v35 }
 0xec0   :  { %v1216_v31 = vmul.f32 %v1215_v40, %v1213_v63 }
 0xec1   :  { %v1207_v39 = vsub.f32 1.5, %v1206_v38 }
 0xec2   :  { %v1219_v14 = vadd.f32 %v1218_v25, %v1216_v31 }
 0xec3   :  { %v1208_v41 = vmul.f32 %v1837_v9, %v1207_v39 }
 0xec5   :  { %v1212_v23 = vsel %vm1211_vm13, %v1837_v9, %v1208_v41  ;;  %v1709_v41 = vld [vmem:[%s2347_s8 + $0x8] sm:$0xff] }
 0xec6   :  { %v1214_v37 = vmul.f32 %v1212_v23, %v1180_v16  ;;  %1440 = vmatpush.bf16.msra.mxu1 %v1709_v41 }
 0xec8   :  { %v1217_v42 = vmul.f32 %v1215_v40, %v1214_v37 }
 0xeca   :  { %v1220_v43 = vadd.f32 %v1218_v25, %v1217_v42  ;;  %v1708_v25 = vld [vmem:[%s2347_s8] sm:$0xff] }
 0xecb   :  { %1441 = vmatpush.bf16.msra.mxu1 %v1708_v25 }
 0xecc   :  { %v1221_v44 = vpack.c.bf16 %v1220_v43, %v1219_v14 }
 0xece   :  { %1613 = vmatmul.msk.bf16.vlgmr.msrb.gmra.mxu3 %vm42_vm0, %v1221_v44 }
 0xf51   :  { %v1252_v58 = vpop.f32.mrf.mxu3 }
 0xf52   :  { %v1253_v59 = vadd.f32 %v1252_v58, %v1227_v56 }
 0xf54   :  { %v1259_v60 = vmul.f32 0.044715, %v1253_v59  ;;  %v1257_v3 = vmul.f32 0.5, %v1253_v59 }
 0xf56   :  { %v1261_v61 = vmul.f32 %v1259_v60, %v1253_v59 }
 0xf58   :  { %v1263_v62 = vmul.f32 %v1261_v61, %v1253_v59 }
 0xf59   :  { %v1254_v0 = vpop.f32.mrf.mxu3 }
 0xf5a   :  { %v1265_v5 = vadd.f32 %v1263_v62, %v1253_v59  ;;  %v1255_v7 = vadd.f32 %v1254_v0, %v1227_v56  ;;  %v1405_v62 = vperm.slane %v2162_v6, 7 }
 0xf5c   :  { %v1260_v53 = vmul.f32 0.044715, %v1255_v7  ;;  %v1267_v24 = vmul.f32 0.7978846, %v1265_v5  ;;  %v1258_v1 = vmul.f32 0.5, %v1255_v7 }
 0xf5e   :  { %v1262_v28 = vmul.f32 %v1260_v53, %v1255_v7  ;;  %1838 = vtanh.f32 %v1267_v24 }
 0xf60   :  { %v1264_v50 = vmul.f32 %v1262_v28, %v1255_v7 }
 0xf62   :  { %v1266_v8 = vadd.f32 %v1264_v50, %v1255_v7 }
 0xf64   :  { %v1268_v11 = vmul.f32 0.7978846, %v1266_v8  ;;  %v1839_v12 = vpop.eup %1838  ;;  %v1711_v8 = vld [vmem:[%s2348_s9 + $0x8] sm:$0xff] }
 0xf65   :  { %v1271_v13 = vadd.f32 1.0, %v1839_v12  ;;  %1475 = vmatpush.bf16.msra.mxu2 %v1711_v8 }
 0xf66   :  { %1840 = vtanh.f32 %v1268_v11  ;;  %v1710_v11 = vld [vmem:[%s2348_s9] sm:$0xff]  ;;  %s1490_s9 = sshll.u32 %s2349_s10, 4  ;;  %s1491_s9 = int_to_ptr.hbm [resolvable:$true] %s1490_s9 }
 0xf67   :  { %v1273_v57 = vmul.f32 %v1271_v13, %v1257_v3 }
 0xf69   :  { %1476 = vmatpush.bf16.msra.mxu2 %v1710_v11 }
 0xf6c   :  { %v1841_v51 = vpop.eup %1840 }
 0xf6d   :  { %v1272_v16 = vadd.f32 1.0, %v1841_v51 }
 0xf6f   :  { %v1274_v17 = vmul.f32 %v1272_v16, %v1258_v1 }
 0xf71   :  { %v1275_v2 = vpack.c.bf16 %v1274_v17, %v1273_v57 }
 0xf73   :  { %1350 = vmatmul.bf16.vlgmr.msrb.gmra.mxu0 %v1275_v2 }
 0xff0   :  { %v1351_v19 = vpop.f32.mrf.mxu0 }
 0xff1   :  { %v1352_v20 = vadd.f32 %v1351_v19, %v1293_v18 }
 0xff3   :  { %v1356_v21 = vadd.f32 %v1352_v20, %v1219_v14 }
 0xff5   :  { %v1358_v22 = vsel %vm42_vm0, %v1356_v21, 0.0 }
 0xff6   :  { %1359 = vadd.xlane.f32.xlu0 %v1358_v22 }
 0xff8   :  { %v1353_v26 = vpop.f32.mrf.mxu0 }
 0xff9   :  { %v1354_v27 = vadd.f32 %v1353_v26, %v1293_v18 }
 0xffb   :  { %v1357_v29 = vadd.f32 %v1354_v27, %v1220_v43 }
 0xffd   :  { %v1361_v30 = vsel %vm42_vm0, %v1357_v29, 0.0 }
 0xffe   :  { %1362 = vadd.xlane.f32.xlu2 %v1361_v30 }
0x1069   :  { %v1360_v32 = vpop.xlane.xlu0 %1359 }
0x106a   :  { %v1364_v15 = vmul.f32 %v1360_v32, %v1948_v10 }
0x106c   :  { %v1366_v33 = vsub.f32 %v1356_v21, %v1364_v15 }
0x106e   :  { %v1368_v9 = vmul.f32 %v1366_v33, %v1366_v33 }
0x1070   :  { %v1370_v34 = vsel %vm42_vm0, %v1368_v9, 0.0 }
0x1071   :  { %v1363_v4 = vpop.xlane.xlu2 %1362  ;;  %1371 = vadd.xlane.f32.xlu0 %v1370_v34 }
0x1072   :  { %v1365_v35 = vmul.f32 %v1363_v4, %v1948_v10 }
0x1074   :  { %v1367_v36 = vsub.f32 %v1357_v29, %v1365_v35 }
0x1076   :  { %v1369_v38 = vmul.f32 %v1367_v36, %v1367_v36 }
0x1078   :  { %v1373_v39 = vsel %vm42_vm0, %v1369_v38, 0.0 }
0x1079   :  { %1374 = vadd.xlane.f32.xlu2 %v1373_v39 }
0x10e4   :  { %v1372_v40 = vpop.xlane.xlu0 %1371 }
0x10e5   :  { %v1376_v63 = vmul.f32 %v1372_v40, %v1948_v10 }
0x10e7   :  { %v1378_v23 = vadd.f32 1e-05, %v1376_v63 }
0x10e9   :  { %1842 = vrsqrt.f32 %v1378_v23  ;;  %vm1386_vm15 = vweird.f32 %v1378_v23 }
0x10ec   :  { %v1375_v31 = vpop.xlane.xlu2 %1374 }
0x10ed   :  { %v1377_v37 = vmul.f32 %v1375_v31, %v1948_v10  ;;  %v1402_v10 = vperm.slane %v2162_v6, 6  ;;  %v1848_v6 = vld [vmem:[%s2346_s7] sm:$0xff] }
0x10ee   :  { %v1418_v12 = vperm.slane %v1848_v6, 2  ;;  %v1453_v57 = vperm.slane %v1848_v6, 3 }
0x10ef   :  { %v1843_v42 = vpop.eup %1842  ;;  %v1379_v14 = vadd.f32 1e-05, %v1377_v37 }
0x10f0   :  { %v1381_v43 = vmul.f32 %v1843_v42, %v1378_v23  ;;  %vm1387_vm14 = vweird.f32 %v1843_v42 }
0x10f1   :  { %1844 = vrsqrt.f32 %v1379_v14  ;;  %vm1388_vm1 = vmor %vm1386_vm15, %vm1387_vm14  ;;  %vm1396_vm3 = vweird.f32 %v1379_v14 }
0x10f2   :  { %v1382_v44 = vmul.f32 %v1843_v42, %v1381_v43 }
0x10f4   :  { %v1383_v45 = vmul.f32 0.5, %v1382_v44 }
0x10f6   :  { %v1384_v46 = vsub.f32 1.5, %v1383_v45 }
0x10f7   :  { %v1845_v47 = vpop.eup %1844 }
0x10f8   :  { %v1391_v48 = vmul.f32 %v1845_v47, %v1379_v14  ;;  %v1385_v49 = vmul.f32 %v1843_v42, %v1384_v46  ;;  %vm1397_vm2 = vweird.f32 %v1845_v47 }
0x10f9   :  { %vm1398_vm4 = vmor %vm1396_vm3, %vm1397_vm2 }
0x10fa   :  { %v1392_v52 = vmul.f32 %v1845_v47, %v1391_v48  ;;  %v1389_v55 = vsel %vm1388_vm1, %v1843_v42, %v1385_v49 }
0x10fb   :  { %v1400_v59 = vmul.f32 %v1389_v55, %v1366_v33 }
0x10fc   :  { %v1393_v54 = vmul.f32 0.5, %v1392_v52 }
0x10fd   :  { %v1403_v0 = vmul.f32 %v1402_v10, %v1400_v59 }
0x10fe   :  { %v1394_v56 = vsub.f32 1.5, %v1393_v54 }
0x10ff   :  { %v1406_v53 = vadd.f32 %v1405_v62, %v1403_v0 }
0x1100   :  { %v1395_v58 = vmul.f32 %v1845_v47, %v1394_v56 }
0x1102   :  { %v1399_v60 = vsel %vm1398_vm4, %v1845_v47, %v1395_v58 }
0x1103   :  { %v1401_v61 = vmul.f32 %v1399_v60, %v1367_v36 }
0x1105   :  { %v1404_v5 = vmul.f32 %v1402_v10, %v1401_v61 }
0x1107   :  { %v1407_v7 = vadd.f32 %v1405_v62, %v1404_v5 }
0x1109   :  { %v1409_v24 = vrot.slane %v1407_v7, 7 }
0x110b   :  { %v1412_v28 = vsel %vm1411_vm5, %v1406_v53, %v1409_v24 }
0x110c   :  { %v1413_v50 = vpack.c.bf16 %v1412_v28, %v1412_v28 }
0x110e   :  { %1670 = vmatmul.msk.bf16.vlgmr.msra.gmra.mxu1 %vm42_vm0, %v1413_v50 }
0x118b   :  { %v1443_v13 = vpop.f32.mrf.mxu1 }
0x118c   :  { %v1444_v51 = vadd.f32 %v1443_v13, %v1418_v12 }
0x118e   :  { %1846 = vtanh.f32 %v1444_v51 }
0x1193   :  { %v1445_v3 = vpop.f32.mrf.mxu1 }
0x1194   :  { %v1847_v1 = vpop.eup %1846 }
0x1195   :  { %v1448_v16 = vpack.c.bf16 %v1847_v1, %v1847_v1 }
0x1197   :  { %1679 = vmatmul.msk.bf16.vlgmr.msra.gmra.mxu2 %vm42_vm0, %v1448_v16 }
0x121a   :  { %v1478_v17 = vpop.f32.mrf.mxu2 }
0x121b   :  { %v1479_v2 = vadd.f32 %v1478_v17, %v1453_v57 }
0x121d   :  { %1482 = vst [vmem:[#allocation2] sm:$0x3] %v1479_v2 }
0x121e   :  { %1493 = dma.vmem_to_hbm [thread:$0]  %s1489_s12, 32, %s1491_s9, [#allocation3]  }
0x1222   :  { %v1480_v18 = vpop.f32.mrf.mxu2 }
0x1223   :  { %1873 = dma.done.wait [#allocation3], 32  }
0x1224   :  { %1874 = vsyncadd [#allocation3], 4294967264 }
0x1225   :  { %1498 = vsyncpa [#allocation3], 1 }

</bundles_post_ra>
